<compile_context>
chip_gen: v7x
topology: tpu7x:2x2x1
jax: 0.10.0
libtpu: 0.0.40
codegen_flags: <defaults>
</compile_context>

<pallas_src>
import functools

import jax
import jax.numpy as jnp
from jax.experimental import pallas as pl
from jax.experimental.pallas import tpu as pltpu


# ------------------------------- helpers ----------------------------------- #

def _round_up(x, m):
    return ((x + m - 1) // m) * m


_TM = 512      # row tile
_TN = 1024     # output-feature tile (lane-dense, multiple of 128)
_TK = 512      # reduction tile (multiple of 128)
_TH = 512      # hidden tile of the fused MLP


@functools.lru_cache(maxsize=None)
def _vmem_limit_bytes():
    # ~3/4 of physical VMEM: 96 MiB on v5e/v6e (128 MiB), 48 MiB on v7x (64 MiB).
    try:
        phys = int(pltpu.get_tpu_info().vmem_capacity_bytes)
    except Exception:
        phys = 64 * 1024 * 1024
    return int(min(phys * 3 // 4, 96 * 1024 * 1024))


# ----------------------------- Pallas kernels ------------------------------ #

def _linear_kernel(*refs, apply_relu, has_bias):
    # grid = (M//tm, N//tn, K//tk); K is the innermost ("arbitrary") axis.
    if has_bias:
        x_ref, w_ref, b_ref, o_ref, acc_ref = refs
    else:
        x_ref, w_ref, o_ref, acc_ref = refs
        b_ref = None
    k = pl.program_id(2)

    @pl.when(k == 0)
    def _init():
        acc_ref[...] = jnp.zeros_like(acc_ref)

    # bf16 MXU operands (activations already bf16), f32 accumulation.
    acc_ref[...] += jnp.dot(x_ref[...], w_ref[...],
                            preferred_element_type=jnp.float32)

    @pl.when(k == pl.num_programs(2) - 1)
    def _finalize():
        y = acc_ref[...]
        if b_ref is not None:
            y = y + b_ref[...]
        if apply_relu:
            y = jnp.maximum(y, 0.0)
        o_ref[...] = y.astype(o_ref.dtype)


def _linear_res_ln_kernel(x_ref, w_ref, b_ref, r_ref, g_ref, beta_ref, o_ref,
                          acc_ref, *, eps):
    # grid = (M//tm, K//tk); tn == N == E, so the epilogue owns the full row and
    # can do LayerNorm(acc + bias + residual) without another HBM round trip.
    k = pl.program_id(1)

    @pl.when(k == 0)
    def _init():
        acc_ref[...] = jnp.zeros_like(acc_ref)

    acc_ref[...] += jnp.dot(x_ref[...], w_ref[...],
                            preferred_element_type=jnp.float32)

    @pl.when(k == pl.num_programs(1) - 1)
    def _finalize():
        y = acc_ref[...] + b_ref[...] + r_ref[...].astype(jnp.float32)
        mu = jnp.mean(y, axis=-1, keepdims=True)
        var = jnp.mean((y - mu) ** 2, axis=-1, keepdims=True)
        yn = (y - mu) * jax.lax.rsqrt(var + eps)
        o_ref[...] = (yn * g_ref[...] + beta_ref[...]).astype(o_ref.dtype)


def _mlp_res_ln_kernel(x_ref, w1_ref, b1_ref, w2_ref, b2_ref, g_ref, beta_ref,
                       o_ref, acc_ref, *, eps):
    # grid = (M//tm, hidden//th); the (tm, th) hidden activation never touches HBM.
    j = pl.program_id(1)

    @pl.when(j == 0)
    def _init():
        acc_ref[...] = jnp.zeros_like(acc_ref)

    h = jnp.dot(x_ref[...], w1_ref[...], preferred_element_type=jnp.float32)
    h = jnp.maximum(h + b1_ref[...], 0.0).astype(jnp.bfloat16)
    acc_ref[...] += jnp.dot(h, w2_ref[...], preferred_element_type=jnp.float32)

    @pl.when(j == pl.num_programs(1) - 1)
    def _finalize():
        # Residual is the MLP input itself: LayerNorm(fc2(relu(fc1(x))) + x).
        y = acc_ref[...] + b2_ref[...] + x_ref[...].astype(jnp.float32)
        mu = jnp.mean(y, axis=-1, keepdims=True)
        var = jnp.mean((y - mu) ** 2, axis=-1, keepdims=True)
        yn = (y - mu) * jax.lax.rsqrt(var + eps)
        o_ref[...] = (yn * g_ref[...] + beta_ref[...]).astype(o_ref.dtype)


def _attn_kernel(q_ref, k_ref, v_ref, o_ref, *, head_dim):
    # q_ref: (S, hb, Dh), k_ref/v_ref: (S, H, Dh)  (bf16, un-permuted head views).
    q = q_ref[...]
    k = k_ref[...]
    v = v_ref[...]

    # energy[s, qh, kh] == torch energy[n, qh, kh, s]; MXU batched over s, bf16 in,
    # f32 accumulation; never materializes an (H, H, S, Dh) intermediate.
    energy = jnp.einsum('sqd,skd->sqk', q, k, preferred_element_type=jnp.float32)
    scaled = energy * (1.0 / (head_dim ** 0.5))

    # softmax over the sequence axis (torch dim=3 of 'nqkh' == axis 0 here).
    m = jnp.max(scaled, axis=0, keepdims=True)
    e = jnp.exp(scaled - m)
    denom = jnp.sum(e, axis=0, keepdims=True)
    att = e * pl.reciprocal(denom, approx=True)      # (S, hb, H)

    # einsum('nqkh,nvhd->nqhd') factorizes: (sum_k att) * (sum_v V).
    att_sum = jnp.sum(att, axis=2)                   # (S, hb)
    v_sum = jnp.sum(v.astype(jnp.float32), axis=1)   # (S, Dh)
    out = att_sum.T[:, :, None] * v_sum[None, :, :]  # (hb, S, Dh)
    o_ref[...] = out.astype(o_ref.dtype)


# ----------------------------- kernel wrappers ------------------------------ #

def pallas_linear(x2d, w, b=None, *, n_out=None, out_dtype=jnp.bfloat16,
                  apply_relu=False):
    """y = relu?(x @ w + b); x bf16 [M, K]; w bf16 [Kp, Np] pre-padded at init."""
    M, K = x2d.shape
    Kp, Np = w.shape
    n_out = Np if n_out is None else n_out

    if M > _TM:
        tm = _TM
        Mp = _round_up(M, tm)
    else:
        tm, Mp = M, M
    tn = _TN if Np > _TN else Np
    tk = _TK if Kp > _TK else Kp

    xp = x2d
    if Mp != M or Kp != K:
        xp = jnp.pad(x2d, ((0, Mp - M), (0, Kp - K)))

    has_bias = b is not None
    in_specs = [
        pl.BlockSpec((tm, tk), lambda i, j, k: (i, k)),
        pl.BlockSpec((tk, tn), lambda i, j, k: (k, j)),
    ]
    args = [xp, w]
    if has_bias:
        in_specs.append(pl.BlockSpec((1, tn), lambda i, j, k: (0, j)))
        args.append(b.reshape(1, Np))

    kernel = functools.partial(_linear_kernel, apply_relu=apply_relu,
                               has_bias=has_bias)
    out = pl.pallas_call(
        kernel,
        out_shape=jax.ShapeDtypeStruct((Mp, Np), out_dtype),
        grid=(Mp // tm, Np // tn, Kp // tk),
        in_specs=in_specs,
        out_specs=pl.BlockSpec((tm, tn), lambda i, j, k: (i, j)),
        scratch_shapes=[pltpu.VMEM((tm, tn), jnp.float32)],
        compiler_params=pltpu.CompilerParams(
            dimension_semantics=("parallel", "parallel", "arbitrary"),
            vmem_limit_bytes=_vmem_limit_bytes()),
        cost_estimate=pl.CostEstimate(
            flops=2 * Mp * Kp * Np,
            transcendentals=0,
            bytes_accessed=(Mp * Kp * 2 + Kp * Np * 2
                            + Mp * Np * jnp.dtype(out_dtype).itemsize)),
    )(*args)

    if Mp != M or Np != n_out:
        out = out[:M, :n_out]
    return out


def pallas_linear_res_ln(x2d, w, b, res2d, gamma, beta, *, eps=1e-5,
                         out_dtype=jnp.bfloat16):
    """LayerNorm(x @ w + b + res) over the last axis, fused matmul epilogue."""
    M, K = x2d.shape
    Kp, N = w.shape                 # N == embed_size (never padded: LN needs exact rows)
    assert res2d.shape == (M, N)

    if M > _TM:
        tm = _TM
        Mp = _round_up(M, tm)
    else:
        tm, Mp = M, M
    tk = _TK if Kp > _TK else Kp

    xp = x2d
    if Mp != M or Kp != K:
        xp = jnp.pad(x2d, ((0, Mp - M), (0, Kp - K)))
    rp = res2d if Mp == M else jnp.pad(res2d, ((0, Mp - M), (0, 0)))

    kernel = functools.partial(_linear_res_ln_kernel, eps=eps)
    out = pl.pallas_call(
        kernel,
        out_shape=jax.ShapeDtypeStruct((Mp, N), out_dtype),
        grid=(Mp // tm, Kp // tk),
        in_specs=[
            pl.BlockSpec((tm, tk), lambda i, k: (i, k)),
            pl.BlockSpec((tk, N), lambda i, k: (k, 0)),
            pl.BlockSpec((1, N), lambda i, k: (0, 0)),
            pl.BlockSpec((tm, N), lambda i, k: (i, 0)),
            pl.BlockSpec((1, N), lambda i, k: (0, 0)),
            pl.BlockSpec((1, N), lambda i, k: (0, 0)),
        ],
        out_specs=pl.BlockSpec((tm, N), lambda i, k: (i, 0)),
        scratch_shapes=[pltpu.VMEM((tm, N), jnp.float32)],
        compiler_params=pltpu.CompilerParams(
            dimension_semantics=("parallel", "arbitrary"),
            vmem_limit_bytes=_vmem_limit_bytes()),
    )(xp, w, b.reshape(1, N), rp, gamma.reshape(1, N), beta.reshape(1, N))
    return out[:M] if Mp != M else out


def pallas_mlp_res_ln(x2d, w1, b1, w2, b2, gamma, beta, *, eps=1e-5,
                      out_dtype=jnp.bfloat16):
    """LayerNorm(fc2(relu(fc1(x))) + x); hidden activation stays in VMEM."""
    M, E = x2d.shape
    E1, Hp = w1.shape
    H2, E2 = w2.shape
    assert E1 == E and H2 == Hp and E2 == E

    if M > _TM:
        tm = _TM
        Mp = _round_up(M, tm)
    else:
        tm, Mp = M, M
    th = _TH if Hp > _TH else Hp

    xp = x2d if Mp == M else jnp.pad(x2d, ((0, Mp - M), (0, 0)))

    kernel = functools.partial(_mlp_res_ln_kernel, eps=eps)
    out = pl.pallas_call(
        kernel,
        out_shape=jax.ShapeDtypeStruct((Mp, E), out_dtype),
        grid=(Mp // tm, Hp // th),
        in_specs=[
            pl.BlockSpec((tm, E), lambda i, j: (i, 0)),
            pl.BlockSpec((E, th), lambda i, j: (0, j)),
            pl.BlockSpec((1, th), lambda i, j: (0, j)),
            pl.BlockSpec((th, E), lambda i, j: (j, 0)),
            pl.BlockSpec((1, E), lambda i, j: (0, 0)),
            pl.BlockSpec((1, E), lambda i, j: (0, 0)),
            pl.BlockSpec((1, E), lambda i, j: (0, 0)),
        ],
        out_specs=pl.BlockSpec((tm, E), lambda i, j: (i, 0)),
        scratch_shapes=[pltpu.VMEM((tm, E), jnp.float32)],
        compiler_params=pltpu.CompilerParams(
            dimension_semantics=("parallel", "arbitrary"),
            vmem_limit_bytes=_vmem_limit_bytes()),
        cost_estimate=pl.CostEstimate(
            flops=4 * Mp * E * Hp,
            transcendentals=0,
            bytes_accessed=(2 * Mp * E * 2 + 2 * E * Hp * 2)),
    )(xp, w1, b1.reshape(1, Hp), w2, b2.reshape(1, E),
      gamma.reshape(1, E), beta.reshape(1, E))
    return out[:M] if Mp != M else out


def pallas_attention(qkv5, *, head_dim):
    """qkv5: (Nb, S, 3, H, Dh) bf16 (un-permuted heads) -> (Nb, H, S, Dh) bf16."""
    Nb, S, three, H, Dh = qkv5.shape
    assert three == 3 and Dh == head_dim
    # >= 2 blocks along the q-head axis at GPT2 scale so v7x's 2nd TC gets work.
    hblk = 8 if (H % 8 == 0 and H >= 16) else H

    kernel = functools.partial(_attn_kernel, head_dim=head_dim)
    return pl.pallas_call(
        kernel,
        out_shape=jax.ShapeDtypeStruct((Nb, H, S, Dh), jnp.bfloat16),
        grid=(Nb, H // hblk),
        in_specs=[
            pl.BlockSpec((None, S, None, hblk, Dh), lambda b, h: (b, 0, 0, h, 0)),
            pl.BlockSpec((None, S, None, H, Dh), lambda b, h: (b, 0, 1, 0, 0)),
            pl.BlockSpec((None, S, None, H, Dh), lambda b, h: (b, 0, 2, 0, 0)),
        ],
        out_specs=pl.BlockSpec((None, hblk, S, Dh), lambda b, h: (b, h, 0, 0)),
        compiler_params=pltpu.CompilerParams(
            dimension_semantics=("parallel", "parallel"),
            vmem_limit_bytes=_vmem_limit_bytes()),
    )(qkv5, qkv5, qkv5)


# ------------------------------- GPT2 model --------------------------------- #

def init_params(key, *, embed_size, heads, num_layers, vocab_size, max_length,
                expansion_factor):
    E = embed_size
    hidden = expansion_factor * E
    scale = 0.02

    def nrm(k, shape):
        return scale * jax.random.normal(k, shape, dtype=jnp.float32)

    def _pdim(n, tile):
        return n if (tile is None or n <= tile) else _round_up(n, tile)

    def pad_w(w, k_tile, n_tile):
        # Pad once at init + cast to bf16 (MXU operand dtype); None = never pad.
        K, N = w.shape
        Kp, Np = _pdim(K, k_tile), _pdim(N, n_tile)
        if (Kp, Np) != (K, N):
            w = jnp.pad(w, ((0, Kp - K), (0, Np - N)))
        return w.astype(jnp.bfloat16)

    def pad_b(b, tile):
        N = b.shape[0]
        Np = _pdim(N, tile)
        return b if Np == N else jnp.pad(b, (0, Np - N))

    keys = jax.random.split(key, 4 + num_layers)
    params = {
        "wte": nrm(keys[0], (vocab_size, E)),
        "wpe": nrm(keys[1], (max_length, E)),
        "w_out": pad_w(nrm(keys[2], (E, vocab_size)), _TK, _TN),
        "b_out": pad_b(nrm(keys[3], (vocab_size,)), _TN),
        "layers": [],
    }
    for li in range(num_layers):
        lk = jax.random.split(keys[4 + li], 9)
        wq, wk, wv = nrm(lk[0], (E, E)), nrm(lk[1], (E, E)), nrm(lk[2], (E, E))
        params["layers"].append({
            # Fused, bias-free QKV projection: columns are [q | k | v].
            "wqkv": pad_w(jnp.concatenate([wq, wk, wv], axis=1), _TK, _TN),
            "wo": pad_w(nrm(lk[3], (E, E)), _TK, None),
            "bo": nrm(lk[4], (E,)),
            "ln1_g": jnp.ones((E,), jnp.float32),
            "ln1_b": jnp.zeros((E,), jnp.float32),
            "ln2_g": jnp.ones((E,), jnp.float32),
            "ln2_b": jnp.zeros((E,), jnp.float32),
            "w1": pad_w(nrm(lk[5], (E, hidden)), None, _TH),
            "b1": pad_b(nrm(lk[6], (hidden,)), _TH),
            "w2": pad_w(nrm(lk[7], (hidden, E)), _TH, None),
            "b2": nrm(lk[8], (E,)),
        })
    return params


def gpt2_forward(tokens, params, *, heads, vocab_size):
    Nb, S = tokens.shape
    E = params["wte"].shape[1]
    Dh = E // heads

    # Embedding lookups (gather) kept as JAX glue; dropout -> identity (eval mode).
    positions = jnp.arange(S, dtype=jnp.int32)
    emb = (jnp.take(params["wte"], tokens, axis=0)
           + jnp.take(params["wpe"], positions, axis=0)[None, :, :])
    x2d = emb.reshape(Nb * S, E).astype(jnp.bfloat16)   # bf16 activations end-to-end

    new_caches = []
    for layer in params["layers"]:
        # Fused bias-free Q/K/V projection: one matmul, N = 3E.
        qkv = pallas_linear(x2d, layer["wqkv"], None, n_out=3 * E)    # (M, 3E) bf16
        qkv5 = qkv.reshape(Nb, S, 3, heads, Dh)

        # KV cache in the reference permute(0,2,1,3) layout (bf16), kept for API parity.
        # TODO(synk): for serving, store un-permuted to skip this HBM relayout
        #             (the cache=None path never consumes it).
        new_caches.append((qkv5[:, :, 1].transpose(0, 2, 1, 3),
                           qkv5[:, :, 2].transpose(0, 2, 1, 3)))

        attn = pallas_attention(qkv5, head_dim=Dh)                    # (Nb, H, S, Dh)
        attn2d = attn.reshape(Nb * S, E)          # row-major == torch .reshape scramble

        # x = dropout(norm1(fc_out(attn) + x)); dropout==identity, add+LN fused epilogue.
        x1 = pallas_linear_res_ln(attn2d, layer["wo"], layer["bo"], x2d,
                                  layer["ln1_g"], layer["ln1_b"])

        # x = dropout(norm2(fc2(relu(fc1(x))) + x)); fused MLP, hidden stays in VMEM.
        x2d = pallas_mlp_res_ln(x1, layer["w1"], layer["b1"], layer["w2"],
                                layer["b2"], layer["ln2_g"], layer["ln2_b"])

    logits2d = pallas_linear(x2d, params["w_out"], params["b_out"],
                             n_out=vocab_size, out_dtype=jnp.float32)
    return logits2d.reshape(Nb, S, vocab_size), new_caches


# ---------------------------------- main ------------------------------------ #

if __name__ == "__main__":
    # Small, forward-consistent config (module: E=1024, H=16, L=24, V=50257).
    EMBED = 32
    HEADS = 4
    LAYERS = 2
    VOCAB = 256
    MAX_LEN = 16
    EXPANSION = 4
    BATCH = 2
    SEQ = 8

    key = jax.random.PRNGKey(0)
    pkey, tkey = jax.random.split(key)

    params = init_params(
        pkey,
        embed_size=EMBED, heads=HEADS, num_layers=LAYERS,
        vocab_size=VOCAB, max_length=MAX_LEN, expansion_factor=EXPANSION,
    )
    tokens = jax.random.randint(tkey, (BATCH, SEQ), 0, VOCAB, dtype=jnp.int32)

    forward = jax.jit(functools.partial(gpt2_forward, heads=HEADS, vocab_size=VOCAB))
    logits, caches = forward(tokens, params)
    logits = jax.block_until_ready(logits)
    assert logits.shape == (BATCH, SEQ, VOCAB)
    assert bool(jnp.all(jnp.isfinite(logits)))
    print("KERNEL_OK")
</pallas_src>

<mosaic_0001>
module attributes {stable_mosaic.version = 11 : i64} {
  func.func @_attn_kernel(%arg0: i32, %arg1: i32, %arg2: memref<1x8x1x4x8xbf16, #tpu.memory_space<vmem>>, %arg3: memref<1x8x1x4x8xbf16, #tpu.memory_space<vmem>>, %arg4: memref<1x8x1x4x8xbf16, #tpu.memory_space<vmem>>, %arg5: memref<1x4x8x8xbf16, #tpu.memory_space<vmem>>) attributes {dimension_semantics = [#tpu.dimension_semantics<parallel>, #tpu.dimension_semantics<parallel>], iteration_bounds = array<i64: 2, 1>, scalar_prefetch = 0 : i64, scratch_operands = 0 : i64, tpu.core_type = #tpu.core_type<tc>, window_params = [{transform_indices = @transform_0, window_bounds = array<i64: 1, 8, 1, 4, 8>}, {transform_indices = @transform_1, window_bounds = array<i64: 1, 8, 1, 4, 8>}, {transform_indices = @transform_2, window_bounds = array<i64: 1, 8, 1, 4, 8>}, {transform_indices = @transform_3, window_bounds = array<i64: 1, 4, 8, 8>}]} {
    %c0 = arith.constant 0 : index
    %c0_0 = arith.constant 0 : index
    %c0_1 = arith.constant 0 : index
    %c0_2 = arith.constant 0 : index
    %c0_3 = arith.constant 0 : index
    %0 = vector.load %arg2[%c0, %c0_0, %c0_1, %c0_2, %c0_3] : memref<1x8x1x4x8xbf16, #tpu.memory_space<vmem>>, vector<1x8x1x4x8xbf16>
    %1 = vector.shape_cast %0 : vector<1x8x1x4x8xbf16> to vector<8x4x8xbf16>
    %c0_4 = arith.constant 0 : index
    %c0_5 = arith.constant 0 : index
    %c0_6 = arith.constant 0 : index
    %c0_7 = arith.constant 0 : index
    %c0_8 = arith.constant 0 : index
    %2 = vector.load %arg3[%c0_4, %c0_5, %c0_6, %c0_7, %c0_8] : memref<1x8x1x4x8xbf16, #tpu.memory_space<vmem>>, vector<1x8x1x4x8xbf16>
    %3 = vector.shape_cast %2 : vector<1x8x1x4x8xbf16> to vector<8x4x8xbf16>
    %c0_9 = arith.constant 0 : index
    %c0_10 = arith.constant 0 : index
    %c0_11 = arith.constant 0 : index
    %c0_12 = arith.constant 0 : index
    %c0_13 = arith.constant 0 : index
    %4 = vector.load %arg4[%c0_9, %c0_10, %c0_11, %c0_12, %c0_13] : memref<1x8x1x4x8xbf16, #tpu.memory_space<vmem>>, vector<1x8x1x4x8xbf16>
    %5 = vector.shape_cast %4 : vector<1x8x1x4x8xbf16> to vector<8x4x8xbf16>
    "tpu.trace_start"() <{level = 10 : i32, message = "sqd,skd->sqk"}> : () -> ()
    %cst = arith.constant dense<0.000000e+00> : vector<8x4x4xf32>
    %6 = tpu.matmul %1, %3, %cst {dimension_numbers = #tpu.dot_dimension_numbers<[2], [2], [1], [1], [0, 0, 0, 1, 1, 1], [0], [0]>} : vector<8x4x8xbf16>, vector<8x4x8xbf16>, vector<8x4x4xf32> -> vector<8x4x4xf32>
    "tpu.trace_stop"() : () -> ()
    %cst_14 = arith.constant 0.353553385 : f32
    %7 = vector.broadcast %cst_14 : f32 to vector<8x4x4xf32>
    %8 = arith.mulf %6, %7 : vector<8x4x4xf32>
    %cst_15 = arith.constant dense<0xFF800000> : vector<4x4xf32>
    %9 = vector.multi_reduction <maximumf>, %8, %cst_15 [0] : vector<8x4x4xf32> to vector<4x4xf32>
    %10 = vector.shape_cast %9 : vector<4x4xf32> to vector<1x4x4xf32>
    %11 = vector.broadcast %10 : vector<1x4x4xf32> to vector<8x4x4xf32>
    %12 = arith.subf %8, %11 : vector<8x4x4xf32>
    %13 = math.exp %12 : vector<8x4x4xf32>
    %cst_16 = arith.constant dense<0.000000e+00> : vector<4x4xf32>
    %14 = vector.multi_reduction <add>, %13, %cst_16 [0] : vector<8x4x4xf32> to vector<4x4xf32>
    %15 = vector.shape_cast %14 : vector<4x4xf32> to vector<1x4x4xf32>
    %16 = tpu.reciprocal %15 {approx = true} : vector<1x4x4xf32> -> vector<1x4x4xf32>
    %17 = vector.broadcast %16 : vector<1x4x4xf32> to vector<8x4x4xf32>
    %18 = arith.mulf %13, %17 : vector<8x4x4xf32>
    %cst_17 = arith.constant dense<0.000000e+00> : vector<8x4xf32>
    %19 = vector.multi_reduction <add>, %18, %cst_17 [2] : vector<8x4x4xf32> to vector<8x4xf32>
    %20 = arith.extf %5 : vector<8x4x8xbf16> to vector<8x4x8xf32>
    %cst_18 = arith.constant dense<0.000000e+00> : vector<8x8xf32>
    %21 = vector.multi_reduction <add>, %20, %cst_18 [1] : vector<8x4x8xf32> to vector<8x8xf32>
    %22 = tpu.transpose %19, [1, 0] : vector<8x4xf32> -> vector<4x8xf32>
    %23 = vector.shape_cast %22 : vector<4x8xf32> to vector<4x8x1xf32>
    %24 = vector.shape_cast %21 : vector<8x8xf32> to vector<1x8x8xf32>
    %25 = vector.broadcast %23 : vector<4x8x1xf32> to vector<4x8x8xf32>
    %26 = vector.broadcast %24 : vector<1x8x8xf32> to vector<4x8x8xf32>
    %27 = arith.mulf %25, %26 : vector<4x8x8xf32>
    %28 = arith.truncf %27 : vector<4x8x8xf32> to vector<4x8x8xbf16>
    %c0_19 = arith.constant 0 : index
    %c0_20 = arith.constant 0 : index
    %c0_21 = arith.constant 0 : index
    %c0_22 = arith.constant 0 : index
    %29 = vector.load %arg5[%c0_19, %c0_20, %c0_21, %c0_22] : memref<1x4x8x8xbf16, #tpu.memory_space<vmem>>, vector<1x4x8x8xbf16>
    %30 = vector.shape_cast %29 : vector<1x4x8x8xbf16> to vector<4x8x8xbf16>
    %31 = vector.shape_cast %28 : vector<4x8x8xbf16> to vector<1x4x8x8xbf16>
    tpu.vector_store %arg5[%c0_19, %c0_20, %c0_21, %c0_22], %31 {strides = array<i32>} : memref<1x4x8x8xbf16, #tpu.memory_space<vmem>>, vector<1x4x8x8xbf16>,
    return
  }
  func.func @transform_0(%arg0: i32, %arg1: i32) -> (i32, i32, i32, i32, i32) {
    %c0_i32 = arith.constant 0 : i32
    %c0_i32_0 = arith.constant 0 : i32
    %c0_i32_1 = arith.constant 0 : i32
    %c0_i32_2 = arith.constant 0 : i32
    return %arg0, %c0_i32, %c0_i32_0, %arg1, %c0_i32_1 : i32, i32, i32, i32, i32
  }
  func.func @transform_1(%arg0: i32, %arg1: i32) -> (i32, i32, i32, i32, i32) {
    %c0_i32 = arith.constant 0 : i32
    %c1_i32 = arith.constant 1 : i32
    %c0_i32_0 = arith.constant 0 : i32
    %c0_i32_1 = arith.constant 0 : i32
    %c0_i32_2 = arith.constant 0 : i32
    return %arg0, %c0_i32, %c1_i32, %c0_i32_0, %c0_i32_1 : i32, i32, i32, i32, i32
  }
  func.func @transform_2(%arg0: i32, %arg1: i32) -> (i32, i32, i32, i32, i32) {
    %c0_i32 = arith.constant 0 : i32
    %c2_i32 = arith.constant 2 : i32
    %c0_i32_0 = arith.constant 0 : i32
    %c0_i32_1 = arith.constant 0 : i32
    %c0_i32_2 = arith.constant 0 : i32
    return %arg0, %c0_i32, %c2_i32, %c0_i32_0, %c0_i32_1 : i32, i32, i32, i32, i32
  }
  func.func @transform_3(%arg0: i32, %arg1: i32) -> (i32, i32, i32, i32) {
    %c0_i32 = arith.constant 0 : i32
    %c0_i32_0 = arith.constant 0 : i32
    %c0_i32_1 = arith.constant 0 : i32
    return %arg0, %arg1, %c0_i32, %c0_i32_0 : i32, i32, i32, i32
  }
}

module attributes {stable_mosaic.version = 11 : i64} {
  func.func @_linear_kernel(%arg0: i32, %arg1: i32, %arg2: i32, %arg3: memref<16x32xbf16, #tpu.memory_space<vmem>>, %arg4: memref<32x96xbf16, #tpu.memory_space<vmem>>, %arg5: memref<16x96xbf16, #tpu.memory_space<vmem>>, %arg6: memref<16x96xf32, #tpu.memory_space<vmem>>) attributes {dimension_semantics = [#tpu.dimension_semantics<parallel>, #tpu.dimension_semantics<parallel>, #tpu.dimension_semantics<arbitrary>], iteration_bounds = array<i64: 1, 1, 1>, scalar_prefetch = 0 : i64, scratch_operands = 1 : i64, tpu.core_type = #tpu.core_type<tc>, window_params = [{transform_indices = @transform_0, window_bounds = array<i64: 16, 32>}, {transform_indices = @transform_1, window_bounds = array<i64: 32, 96>}, {transform_indices = @transform_2, window_bounds = array<i64: 16, 96>}]} {
    %c0_i32 = arith.constant 0 : i32
    %0 = arith.cmpi eq, %arg2, %c0_i32 : i32
    %1 = arith.extui %0 : i1 to i32
    %c0_i32_0 = arith.constant 0 : i32
    %2 = arith.cmpi ne, %1, %c0_i32_0 : i32
    scf.if %2 {
      %cst_10 = arith.constant 0.000000e+00 : f32
      %12 = vector.broadcast %cst_10 : f32 to vector<16x96xf32>
      %c0_11 = arith.constant 0 : index
      %c0_12 = arith.constant 0 : index
      %13 = vector.load %arg6[%c0_11, %c0_12] : memref<16x96xf32, #tpu.memory_space<vmem>>, vector<16x96xf32>
      tpu.vector_store %arg6[%c0_11, %c0_12], %12 {strides = array<i32>} : memref<16x96xf32, #tpu.memory_space<vmem>>, vector<16x96xf32>,
    } else {
    }
    %c0 = arith.constant 0 : index
    %c0_1 = arith.constant 0 : index
    %3 = vector.load %arg6[%c0, %c0_1] : memref<16x96xf32, #tpu.memory_space<vmem>>, vector<16x96xf32>
    %c0_2 = arith.constant 0 : index
    %c0_3 = arith.constant 0 : index
    %4 = vector.load %arg3[%c0_2, %c0_3] : memref<16x32xbf16, #tpu.memory_space<vmem>>, vector<16x32xbf16>
    %c0_4 = arith.constant 0 : index
    %c0_5 = arith.constant 0 : index
    %5 = vector.load %arg4[%c0_4, %c0_5] : memref<32x96xbf16, #tpu.memory_space<vmem>>, vector<32x96xbf16>
    %cst = arith.constant dense<0.000000e+00> : vector<16x96xf32>
    %6 = tpu.matmul %4, %5, %cst {dimension_numbers = #tpu.dot_dimension_numbers<[1], [0], [0], [1], [0, 0, 1, 1], [], []>} : vector<16x32xbf16>, vector<32x96xbf16>, vector<16x96xf32> -> vector<16x96xf32>
    %7 = arith.addf %3, %6 : vector<16x96xf32>
    %c0_6 = arith.constant 0 : index
    %c0_7 = arith.constant 0 : index
    %8 = vector.load %arg6[%c0_6, %c0_7] : memref<16x96xf32, #tpu.memory_space<vmem>>, vector<16x96xf32>
    tpu.vector_store %arg6[%c0_6, %c0_7], %7 {strides = array<i32>} : memref<16x96xf32, #tpu.memory_space<vmem>>, vector<16x96xf32>,
    %c0_i32_8 = arith.constant 0 : i32
    %9 = arith.cmpi eq, %arg2, %c0_i32_8 : i32
    %10 = arith.extui %9 : i1 to i32
    %c0_i32_9 = arith.constant 0 : i32
    %11 = arith.cmpi ne, %10, %c0_i32_9 : i32
    scf.if %11 {
      %c0_10 = arith.constant 0 : index
      %c0_11 = arith.constant 0 : index
      %12 = vector.load %arg6[%c0_10, %c0_11] : memref<16x96xf32, #tpu.memory_space<vmem>>, vector<16x96xf32>
      %13 = arith.truncf %12 : vector<16x96xf32> to vector<16x96xbf16>
      %c0_12 = arith.constant 0 : index
      %c0_13 = arith.constant 0 : index
      %14 = vector.load %arg5[%c0_12, %c0_13] : memref<16x96xbf16, #tpu.memory_space<vmem>>, vector<16x96xbf16>
      tpu.vector_store %arg5[%c0_12, %c0_13], %13 {strides = array<i32>} : memref<16x96xbf16, #tpu.memory_space<vmem>>, vector<16x96xbf16>,
    } else {
    }
    return
  }
  func.func @transform_0(%arg0: i32, %arg1: i32, %arg2: i32) -> (i32, i32) {
    %c0_i32 = arith.constant 0 : i32
    return %arg0, %arg2 : i32, i32
  }
  func.func @transform_1(%arg0: i32, %arg1: i32, %arg2: i32) -> (i32, i32) {
    %c0_i32 = arith.constant 0 : i32
    return %arg2, %arg1 : i32, i32
  }
  func.func @transform_2(%arg0: i32, %arg1: i32, %arg2: i32) -> (i32, i32) {
    %c0_i32 = arith.constant 0 : i32
    return %arg0, %arg1 : i32, i32
  }
}

module attributes {stable_mosaic.version = 11 : i64} {
  func.func @_linear_res_ln_kernel(%arg0: i32, %arg1: i32, %arg2: memref<16x32xbf16, #tpu.memory_space<vmem>>, %arg3: memref<32x32xbf16, #tpu.memory_space<vmem>>, %arg4: memref<1x32xf32, #tpu.memory_space<vmem>>, %arg5: memref<16x32xbf16, #tpu.memory_space<vmem>>, %arg6: memref<1x32xf32, #tpu.memory_space<vmem>>, %arg7: memref<1x32xf32, #tpu.memory_space<vmem>>, %arg8: memref<16x32xbf16, #tpu.memory_space<vmem>>, %arg9: memref<16x32xf32, #tpu.memory_space<vmem>>) attributes {dimension_semantics = [#tpu.dimension_semantics<parallel>, #tpu.dimension_semantics<arbitrary>], iteration_bounds = array<i64: 1, 1>, scalar_prefetch = 0 : i64, scratch_operands = 1 : i64, tpu.core_type = #tpu.core_type<tc>, window_params = [{transform_indices = @transform_0, window_bounds = array<i64: 16, 32>}, {transform_indices = @transform_1, window_bounds = array<i64: 32, 32>}, {pipeline_mode = #tpu.pipeline_mode<synchronous>, transform_indices = @transform_2, window_bounds = array<i64: 1, 32>}, {transform_indices = @transform_3, window_bounds = array<i64: 16, 32>}, {pipeline_mode = #tpu.pipeline_mode<synchronous>, transform_indices = @transform_4, window_bounds = array<i64: 1, 32>}, {pipeline_mode = #tpu.pipeline_mode<synchronous>, transform_indices = @transform_5, window_bounds = array<i64: 1, 32>}, {transform_indices = @transform_6, window_bounds = array<i64: 16, 32>}]} {
    %c0_i32 = arith.constant 0 : i32
    %0 = arith.cmpi eq, %arg1, %c0_i32 : i32
    %1 = arith.extui %0 : i1 to i32
    %c0_i32_0 = arith.constant 0 : i32
    %2 = arith.cmpi ne, %1, %c0_i32_0 : i32
    scf.if %2 {
      %cst_10 = arith.constant 0.000000e+00 : f32
      %12 = vector.broadcast %cst_10 : f32 to vector<16x32xf32>
      %c0_11 = arith.constant 0 : index
      %c0_12 = arith.constant 0 : index
      %13 = vector.load %arg9[%c0_11, %c0_12] : memref<16x32xf32, #tpu.memory_space<vmem>>, vector<16x32xf32>
      tpu.vector_store %arg9[%c0_11, %c0_12], %12 {strides = array<i32>} : memref<16x32xf32, #tpu.memory_space<vmem>>, vector<16x32xf32>,
    } else {
    }
    %c0 = arith.constant 0 : index
    %c0_1 = arith.constant 0 : index
    %3 = vector.load %arg9[%c0, %c0_1] : memref<16x32xf32, #tpu.memory_space<vmem>>, vector<16x32xf32>
    %c0_2 = arith.constant 0 : index
    %c0_3 = arith.constant 0 : index
    %4 = vector.load %arg2[%c0_2, %c0_3] : memref<16x32xbf16, #tpu.memory_space<vmem>>, vector<16x32xbf16>
    %c0_4 = arith.constant 0 : index
    %c0_5 = arith.constant 0 : index
    %5 = vector.load %arg3[%c0_4, %c0_5] : memref<32x32xbf16, #tpu.memory_space<vmem>>, vector<32x32xbf16>
    %cst = arith.constant dense<0.000000e+00> : vector<16x32xf32>
    %6 = tpu.matmul %4, %5, %cst {dimension_numbers = #tpu.dot_dimension_numbers<[1], [0], [0], [1], [0, 0, 1, 1], [], []>} : vector<16x32xbf16>, vector<32x32xbf16>, vector<16x32xf32> -> vector<16x32xf32>
    %7 = arith.addf %3, %6 : vector<16x32xf32>
    %c0_6 = arith.constant 0 : index
    %c0_7 = arith.constant 0 : index
    %8 = vector.load %arg9[%c0_6, %c0_7] : memref<16x32xf32, #tpu.memory_space<vmem>>, vector<16x32xf32>
    tpu.vector_store %arg9[%c0_6, %c0_7], %7 {strides = array<i32>} : memref<16x32xf32, #tpu.memory_space<vmem>>, vector<16x32xf32>,
    %c0_i32_8 = arith.constant 0 : i32
    %9 = arith.cmpi eq, %arg1, %c0_i32_8 : i32
    %10 = arith.extui %9 : i1 to i32
    %c0_i32_9 = arith.constant 0 : i32
    %11 = arith.cmpi ne, %10, %c0_i32_9 : i32
    scf.if %11 {
      %c0_10 = arith.constant 0 : index
      %c0_11 = arith.constant 0 : index
      %12 = vector.load %arg9[%c0_10, %c0_11] : memref<16x32xf32, #tpu.memory_space<vmem>>, vector<16x32xf32>
      %c0_12 = arith.constant 0 : index
      %c0_13 = arith.constant 0 : index
      %13 = vector.load %arg4[%c0_12, %c0_13] : memref<1x32xf32, #tpu.memory_space<vmem>>, vector<1x32xf32>
      %14 = vector.broadcast %13 : vector<1x32xf32> to vector<16x32xf32>
      %15 = arith.addf %12, %14 : vector<16x32xf32>
      %c0_14 = arith.constant 0 : index
      %c0_15 = arith.constant 0 : index
      %16 = vector.load %arg5[%c0_14, %c0_15] : memref<16x32xbf16, #tpu.memory_space<vmem>>, vector<16x32xbf16>
      %17 = arith.extf %16 : vector<16x32xbf16> to vector<16x32xf32>
      %18 = arith.addf %15, %17 : vector<16x32xf32>
      %cst_16 = arith.constant dense<0.000000e+00> : vector<16xf32>
      %19 = vector.multi_reduction <add>, %18, %cst_16 [1] : vector<16x32xf32> to vector<16xf32>
      %20 = vector.shape_cast %19 : vector<16xf32> to vector<16x1xf32>
      %cst_17 = arith.constant 3.200000e+01 : f32
      %21 = vector.broadcast %cst_17 : f32 to vector<16x1xf32>
      %22 = arith.divf %20, %21 : vector<16x1xf32>
      %23 = vector.broadcast %22 : vector<16x1xf32> to vector<16x32xf32>
      %24 = arith.subf %18, %23 : vector<16x32xf32>
      %25 = arith.mulf %24, %24 : vector<16x32xf32>
      %cst_18 = arith.constant dense<0.000000e+00> : vector<16xf32>
      %26 = vector.multi_reduction <add>, %25, %cst_18 [1] : vector<16x32xf32> to vector<16xf32>
      %27 = vector.shape_cast %26 : vector<16xf32> to vector<16x1xf32>
      %cst_19 = arith.constant 3.200000e+01 : f32
      %28 = vector.broadcast %cst_19 : f32 to vector<16x1xf32>
      %29 = arith.divf %27, %28 : vector<16x1xf32>
      %30 = vector.broadcast %22 : vector<16x1xf32> to vector<16x32xf32>
      %31 = arith.subf %18, %30 : vector<16x32xf32>
      %cst_20 = arith.constant 9.99999974E-6 : f32
      %32 = vector.broadcast %cst_20 : f32 to vector<16x1xf32>
      %33 = arith.addf %29, %32 : vector<16x1xf32>
      %34 = math.rsqrt %33 : vector<16x1xf32>
      %35 = vector.broadcast %34 : vector<16x1xf32> to vector<16x32xf32>
      %36 = arith.mulf %31, %35 : vector<16x32xf32>
      %c0_21 = arith.constant 0 : index
      %c0_22 = arith.constant 0 : index
      %37 = vector.load %arg6[%c0_21, %c0_22] : memref<1x32xf32, #tpu.memory_space<vmem>>, vector<1x32xf32>
      %38 = vector.broadcast %37 : vector<1x32xf32> to vector<16x32xf32>
      %39 = arith.mulf %36, %38 : vector<16x32xf32>
      %c0_23 = arith.constant 0 : index
      %c0_24 = arith.constant 0 : index
      %40 = vector.load %arg7[%c0_23, %c0_24] : memref<1x32xf32, #tpu.memory_space<vmem>>, vector<1x32xf32>
      %41 = vector.broadcast %40 : vector<1x32xf32> to vector<16x32xf32>
      %42 = arith.addf %39, %41 : vector<16x32xf32>
      %43 = arith.truncf %42 : vector<16x32xf32> to vector<16x32xbf16>
      %c0_25 = arith.constant 0 : index
      %c0_26 = arith.constant 0 : index
      %44 = vector.load %arg8[%c0_25, %c0_26] : memref<16x32xbf16, #tpu.memory_space<vmem>>, vector<16x32xbf16>
      tpu.vector_store %arg8[%c0_25, %c0_26], %43 {strides = array<i32>} : memref<16x32xbf16, #tpu.memory_space<vmem>>, vector<16x32xbf16>,
    } else {
    }
    return
  }
  func.func @transform_0(%arg0: i32, %arg1: i32) -> (i32, i32) {
    %c0_i32 = arith.constant 0 : i32
    return %arg0, %arg1 : i32, i32
  }
  func.func @transform_1(%arg0: i32, %arg1: i32) -> (i32, i32) {
    %c0_i32 = arith.constant 0 : i32
    %c0_i32_0 = arith.constant 0 : i32
    return %arg1, %c0_i32 : i32, i32
  }
  func.func @transform_2(%arg0: i32, %arg1: i32) -> (i32, i32) {
    %c0_i32 = arith.constant 0 : i32
    %c0_i32_0 = arith.constant 0 : i32
    %c0_i32_1 = arith.constant 0 : i32
    return %c0_i32, %c0_i32_0 : i32, i32
  }
  func.func @transform_3(%arg0: i32, %arg1: i32) -> (i32, i32) {
    %c0_i32 = arith.constant 0 : i32
    %c0_i32_0 = arith.constant 0 : i32
    return %arg0, %c0_i32 : i32, i32
  }
  func.func @transform_4(%arg0: i32, %arg1: i32) -> (i32, i32) {
    %c0_i32 = arith.constant 0 : i32
    %c0_i32_0 = arith.constant 0 : i32
    %c0_i32_1 = arith.constant 0 : i32
    return %c0_i32, %c0_i32_0 : i32, i32
  }
  func.func @transform_5(%arg0: i32, %arg1: i32) -> (i32, i32) {
    %c0_i32 = arith.constant 0 : i32
    %c0_i32_0 = arith.constant 0 : i32
    %c0_i32_1 = arith.constant 0 : i32
    return %c0_i32, %c0_i32_0 : i32, i32
  }
  func.func @transform_6(%arg0: i32, %arg1: i32) -> (i32, i32) {
    %c0_i32 = arith.constant 0 : i32
    %c0_i32_0 = arith.constant 0 : i32
    return %arg0, %c0_i32 : i32, i32
  }
}

module attributes {stable_mosaic.version = 11 : i64} {
  func.func @_mlp_res_ln_kernel(%arg0: i32, %arg1: i32, %arg2: memref<16x32xbf16, #tpu.memory_space<vmem>>, %arg3: memref<32x128xbf16, #tpu.memory_space<vmem>>, %arg4: memref<1x128xf32, #tpu.memory_space<vmem>>, %arg5: memref<128x32xbf16, #tpu.memory_space<vmem>>, %arg6: memref<1x32xf32, #tpu.memory_space<vmem>>, %arg7: memref<1x32xf32, #tpu.memory_space<vmem>>, %arg8: memref<1x32xf32, #tpu.memory_space<vmem>>, %arg9: memref<16x32xbf16, #tpu.memory_space<vmem>>, %arg10: memref<16x32xf32, #tpu.memory_space<vmem>>) attributes {dimension_semantics = [#tpu.dimension_semantics<parallel>, #tpu.dimension_semantics<arbitrary>], iteration_bounds = array<i64: 1, 1>, scalar_prefetch = 0 : i64, scratch_operands = 1 : i64, tpu.core_type = #tpu.core_type<tc>, window_params = [{transform_indices = @transform_0, window_bounds = array<i64: 16, 32>}, {transform_indices = @transform_1, window_bounds = array<i64: 32, 128>}, {transform_indices = @transform_2, window_bounds = array<i64: 1, 128>}, {transform_indices = @transform_3, window_bounds = array<i64: 128, 32>}, {pipeline_mode = #tpu.pipeline_mode<synchronous>, transform_indices = @transform_4, window_bounds = array<i64: 1, 32>}, {pipeline_mode = #tpu.pipeline_mode<synchronous>, transform_indices = @transform_5, window_bounds = array<i64: 1, 32>}, {pipeline_mode = #tpu.pipeline_mode<synchronous>, transform_indices = @transform_6, window_bounds = array<i64: 1, 32>}, {transform_indices = @transform_7, window_bounds = array<i64: 16, 32>}]} {
    %c0_i32 = arith.constant 0 : i32
    %0 = arith.cmpi eq, %arg1, %c0_i32 : i32
    %1 = arith.extui %0 : i1 to i32
    %c0_i32_0 = arith.constant 0 : i32
    %2 = arith.cmpi ne, %1, %c0_i32_0 : i32
    scf.if %2 {
      %cst_16 = arith.constant 0.000000e+00 : f32
      %20 = vector.broadcast %cst_16 : f32 to vector<16x32xf32>
      %c0_17 = arith.constant 0 : index
      %c0_18 = arith.constant 0 : index
      %21 = vector.load %arg10[%c0_17, %c0_18] : memref<16x32xf32, #tpu.memory_space<vmem>>, vector<16x32xf32>
      tpu.vector_store %arg10[%c0_17, %c0_18], %20 {strides = array<i32>} : memref<16x32xf32, #tpu.memory_space<vmem>>, vector<16x32xf32>,
    } else {
    }
    %c0 = arith.constant 0 : index
    %c0_1 = arith.constant 0 : index
    %3 = vector.load %arg2[%c0, %c0_1] : memref<16x32xbf16, #tpu.memory_space<vmem>>, vector<16x32xbf16>
    %c0_2 = arith.constant 0 : index
    %c0_3 = arith.constant 0 : index
    %4 = vector.load %arg3[%c0_2, %c0_3] : memref<32x128xbf16, #tpu.memory_space<vmem>>, vector<32x128xbf16>
    %cst = arith.constant dense<0.000000e+00> : vector<16x128xf32>
    %5 = tpu.matmul %3, %4, %cst {dimension_numbers = #tpu.dot_dimension_numbers<[1], [0], [0], [1], [0, 0, 1, 1], [], []>} : vector<16x32xbf16>, vector<32x128xbf16>, vector<16x128xf32> -> vector<16x128xf32>
    %c0_4 = arith.constant 0 : index
    %c0_5 = arith.constant 0 : index
    %6 = vector.load %arg4[%c0_4, %c0_5] : memref<1x128xf32, #tpu.memory_space<vmem>>, vector<1x128xf32>
    %7 = vector.broadcast %6 : vector<1x128xf32> to vector<16x128xf32>
    %8 = arith.addf %5, %7 : vector<16x128xf32>
    %cst_6 = arith.constant 0.000000e+00 : f32
    %9 = vector.broadcast %cst_6 : f32 to vector<16x128xf32>
    %10 = arith.maximumf %8, %9 : vector<16x128xf32>
    %11 = arith.truncf %10 : vector<16x128xf32> to vector<16x128xbf16>
    %c0_7 = arith.constant 0 : index
    %c0_8 = arith.constant 0 : index
    %12 = vector.load %arg10[%c0_7, %c0_8] : memref<16x32xf32, #tpu.memory_space<vmem>>, vector<16x32xf32>
    %c0_9 = arith.constant 0 : index
    %c0_10 = arith.constant 0 : index
    %13 = vector.load %arg5[%c0_9, %c0_10] : memref<128x32xbf16, #tpu.memory_space<vmem>>, vector<128x32xbf16>
    %cst_11 = arith.constant dense<0.000000e+00> : vector<16x32xf32>
    %14 = tpu.matmul %11, %13, %cst_11 {dimension_numbers = #tpu.dot_dimension_numbers<[1], [0], [0], [1], [0, 0, 1, 1], [], []>} : vector<16x128xbf16>, vector<128x32xbf16>, vector<16x32xf32> -> vector<16x32xf32>
    %15 = arith.addf %12, %14 : vector<16x32xf32>
    %c0_12 = arith.constant 0 : index
    %c0_13 = arith.constant 0 : index
    %16 = vector.load %arg10[%c0_12, %c0_13] : memref<16x32xf32, #tpu.memory_space<vmem>>, vector<16x32xf32>
    tpu.vector_store %arg10[%c0_12, %c0_13], %15 {strides = array<i32>} : memref<16x32xf32, #tpu.memory_space<vmem>>, vector<16x32xf32>,
    %c0_i32_14 = arith.constant 0 : i32
    %17 = arith.cmpi eq, %arg1, %c0_i32_14 : i32
    %18 = arith.extui %17 : i1 to i32
    %c0_i32_15 = arith.constant 0 : i32
    %19 = arith.cmpi ne, %18, %c0_i32_15 : i32
    scf.if %19 {
      %c0_16 = arith.constant 0 : index
      %c0_17 = arith.constant 0 : index
      %20 = vector.load %arg10[%c0_16, %c0_17] : memref<16x32xf32, #tpu.memory_space<vmem>>, vector<16x32xf32>
      %c0_18 = arith.constant 0 : index
      %c0_19 = arith.constant 0 : index
      %21 = vector.load %arg6[%c0_18, %c0_19] : memref<1x32xf32, #tpu.memory_space<vmem>>, vector<1x32xf32>
      %22 = vector.broadcast %21 : vector<1x32xf32> to vector<16x32xf32>
      %23 = arith.addf %20, %22 : vector<16x32xf32>
      %c0_20 = arith.constant 0 : index
      %c0_21 = arith.constant 0 : index
      %24 = vector.load %arg2[%c0_20, %c0_21] : memref<16x32xbf16, #tpu.memory_space<vmem>>, vector<16x32xbf16>
      %25 = arith.extf %24 : vector<16x32xbf16> to vector<16x32xf32>
      %26 = arith.addf %23, %25 : vector<16x32xf32>
      %cst_22 = arith.constant dense<0.000000e+00> : vector<16xf32>
      %27 = vector.multi_reduction <add>, %26, %cst_22 [1] : vector<16x32xf32> to vector<16xf32>
      %28 = vector.shape_cast %27 : vector<16xf32> to vector<16x1xf32>
      %cst_23 = arith.constant 3.200000e+01 : f32
      %29 = vector.broadcast %cst_23 : f32 to vector<16x1xf32>
      %30 = arith.divf %28, %29 : vector<16x1xf32>
      %31 = vector.broadcast %30 : vector<16x1xf32> to vector<16x32xf32>
      %32 = arith.subf %26, %31 : vector<16x32xf32>
      %33 = arith.mulf %32, %32 : vector<16x32xf32>
      %cst_24 = arith.constant dense<0.000000e+00> : vector<16xf32>
      %34 = vector.multi_reduction <add>, %33, %cst_24 [1] : vector<16x32xf32> to vector<16xf32>
      %35 = vector.shape_cast %34 : vector<16xf32> to vector<16x1xf32>
      %cst_25 = arith.constant 3.200000e+01 : f32
      %36 = vector.broadcast %cst_25 : f32 to vector<16x1xf32>
      %37 = arith.divf %35, %36 : vector<16x1xf32>
      %38 = vector.broadcast %30 : vector<16x1xf32> to vector<16x32xf32>
      %39 = arith.subf %26, %38 : vector<16x32xf32>
      %cst_26 = arith.constant 9.99999974E-6 : f32
      %40 = vector.broadcast %cst_26 : f32 to vector<16x1xf32>
      %41 = arith.addf %37, %40 : vector<16x1xf32>
      %42 = math.rsqrt %41 : vector<16x1xf32>
      %43 = vector.broadcast %42 : vector<16x1xf32> to vector<16x32xf32>
      %44 = arith.mulf %39, %43 : vector<16x32xf32>
      %c0_27 = arith.constant 0 : index
      %c0_28 = arith.constant 0 : index
      %45 = vector.load %arg7[%c0_27, %c0_28] : memref<1x32xf32, #tpu.memory_space<vmem>>, vector<1x32xf32>
      %46 = vector.broadcast %45 : vector<1x32xf32> to vector<16x32xf32>
      %47 = arith.mulf %44, %46 : vector<16x32xf32>
      %c0_29 = arith.constant 0 : index
      %c0_30 = arith.constant 0 : index
      %48 = vector.load %arg8[%c0_29, %c0_30] : memref<1x32xf32, #tpu.memory_space<vmem>>, vector<1x32xf32>
      %49 = vector.broadcast %48 : vector<1x32xf32> to vector<16x32xf32>
      %50 = arith.addf %47, %49 : vector<16x32xf32>
      %51 = arith.truncf %50 : vector<16x32xf32> to vector<16x32xbf16>
      %c0_31 = arith.constant 0 : index
      %c0_32 = arith.constant 0 : index
      %52 = vector.load %arg9[%c0_31, %c0_32] : memref<16x32xbf16, #tpu.memory_space<vmem>>, vector<16x32xbf16>
      tpu.vector_store %arg9[%c0_31, %c0_32], %51 {strides = array<i32>} : memref<16x32xbf16, #tpu.memory_space<vmem>>, vector<16x32xbf16>,
    } else {
    }
    return
  }
  func.func @transform_0(%arg0: i32, %arg1: i32) -> (i32, i32) {
    %c0_i32 = arith.constant 0 : i32
    %c0_i32_0 = arith.constant 0 : i32
    return %arg0, %c0_i32 : i32, i32
  }
  func.func @transform_1(%arg0: i32, %arg1: i32) -> (i32, i32) {
    %c0_i32 = arith.constant 0 : i32
    %c0_i32_0 = arith.constant 0 : i32
    return %c0_i32, %arg1 : i32, i32
  }
  func.func @transform_2(%arg0: i32, %arg1: i32) -> (i32, i32) {
    %c0_i32 = arith.constant 0 : i32
    %c0_i32_0 = arith.constant 0 : i32
    return %c0_i32, %arg1 : i32, i32
  }
  func.func @transform_3(%arg0: i32, %arg1: i32) -> (i32, i32) {
    %c0_i32 = arith.constant 0 : i32
    %c0_i32_0 = arith.constant 0 : i32
    return %arg1, %c0_i32 : i32, i32
  }
  func.func @transform_4(%arg0: i32, %arg1: i32) -> (i32, i32) {
    %c0_i32 = arith.constant 0 : i32
    %c0_i32_0 = arith.constant 0 : i32
    %c0_i32_1 = arith.constant 0 : i32
    return %c0_i32, %c0_i32_0 : i32, i32
  }
  func.func @transform_5(%arg0: i32, %arg1: i32) -> (i32, i32) {
    %c0_i32 = arith.constant 0 : i32
    %c0_i32_0 = arith.constant 0 : i32
    %c0_i32_1 = arith.constant 0 : i32
    return %c0_i32, %c0_i32_0 : i32, i32
  }
  func.func @transform_6(%arg0: i32, %arg1: i32) -> (i32, i32) {
    %c0_i32 = arith.constant 0 : i32
    %c0_i32_0 = arith.constant 0 : i32
    %c0_i32_1 = arith.constant 0 : i32
    return %c0_i32, %c0_i32_0 : i32, i32
  }
  func.func @transform_7(%arg0: i32, %arg1: i32) -> (i32, i32) {
    %c0_i32 = arith.constant 0 : i32
    %c0_i32_0 = arith.constant 0 : i32
    return %arg0, %c0_i32 : i32, i32
  }
}

module attributes {stable_mosaic.version = 11 : i64} {
  func.func @_linear_kernel(%arg0: i32, %arg1: i32, %arg2: i32, %arg3: memref<16x32xbf16, #tpu.memory_space<vmem>>, %arg4: memref<32x256xbf16, #tpu.memory_space<vmem>>, %arg5: memref<1x256xf32, #tpu.memory_space<vmem>>, %arg6: memref<16x256xf32, #tpu.memory_space<vmem>>, %arg7: memref<16x256xf32, #tpu.memory_space<vmem>>) attributes {dimension_semantics = [#tpu.dimension_semantics<parallel>, #tpu.dimension_semantics<parallel>, #tpu.dimension_semantics<arbitrary>], iteration_bounds = array<i64: 1, 1, 1>, scalar_prefetch = 0 : i64, scratch_operands = 1 : i64, tpu.core_type = #tpu.core_type<tc>, window_params = [{transform_indices = @transform_0, window_bounds = array<i64: 16, 32>}, {transform_indices = @transform_1, window_bounds = array<i64: 32, 256>}, {transform_indices = @transform_2, window_bounds = array<i64: 1, 256>}, {transform_indices = @transform_3, window_bounds = array<i64: 16, 256>}]} {
    %c0_i32 = arith.constant 0 : i32
    %0 = arith.cmpi eq, %arg2, %c0_i32 : i32
    %1 = arith.extui %0 : i1 to i32
    %c0_i32_0 = arith.constant 0 : i32
    %2 = arith.cmpi ne, %1, %c0_i32_0 : i32
    scf.if %2 {
      %cst_10 = arith.constant 0.000000e+00 : f32
      %12 = vector.broadcast %cst_10 : f32 to vector<16x256xf32>
      %c0_11 = arith.constant 0 : index
      %c0_12 = arith.constant 0 : index
      %13 = vector.load %arg7[%c0_11, %c0_12] : memref<16x256xf32, #tpu.memory_space<vmem>>, vector<16x256xf32>
      tpu.vector_store %arg7[%c0_11, %c0_12], %12 {strides = array<i32>} : memref<16x256xf32, #tpu.memory_space<vmem>>, vector<16x256xf32>,
    } else {
    }
    %c0 = arith.constant 0 : index
    %c0_1 = arith.constant 0 : index
    %3 = vector.load %arg7[%c0, %c0_1] : memref<16x256xf32, #tpu.memory_space<vmem>>, vector<16x256xf32>
    %c0_2 = arith.constant 0 : index
    %c0_3 = arith.constant 0 : index
    %4 = vector.load %arg3[%c0_2, %c0_3] : memref<16x32xbf16, #tpu.memory_space<vmem>>, vector<16x32xbf16>
    %c0_4 = arith.constant 0 : index
    %c0_5 = arith.constant 0 : index
    %5 = vector.load %arg4[%c0_4, %c0_5] : memref<32x256xbf16, #tpu.memory_space<vmem>>, vector<32x256xbf16>
    %cst = arith.constant dense<0.000000e+00> : vector<16x256xf32>
    %6 = tpu.matmul %4, %5, %cst {dimension_numbers = #tpu.dot_dimension_numbers<[1], [0], [0], [1], [0, 0, 1, 1], [], []>} : vector<16x32xbf16>, vector<32x256xbf16>, vector<16x256xf32> -> vector<16x256xf32>
    %7 = arith.addf %3, %6 : vector<16x256xf32>
    %c0_6 = arith.constant 0 : index
    %c0_7 = arith.constant 0 : index
    %8 = vector.load %arg7[%c0_6, %c0_7] : memref<16x256xf32, #tpu.memory_space<vmem>>, vector<16x256xf32>
    tpu.vector_store %arg7[%c0_6, %c0_7], %7 {strides = array<i32>} : memref<16x256xf32, #tpu.memory_space<vmem>>, vector<16x256xf32>,
    %c0_i32_8 = arith.constant 0 : i32
    %9 = arith.cmpi eq, %arg2, %c0_i32_8 : i32
    %10 = arith.extui %9 : i1 to i32
    %c0_i32_9 = arith.constant 0 : i32
    %11 = arith.cmpi ne, %10, %c0_i32_9 : i32
    scf.if %11 {
      %c0_10 = arith.constant 0 : index
      %c0_11 = arith.constant 0 : index
      %12 = vector.load %arg7[%c0_10, %c0_11] : memref<16x256xf32, #tpu.memory_space<vmem>>, vector<16x256xf32>
      %c0_12 = arith.constant 0 : index
      %c0_13 = arith.constant 0 : index
      %13 = vector.load %arg5[%c0_12, %c0_13] : memref<1x256xf32, #tpu.memory_space<vmem>>, vector<1x256xf32>
      %14 = vector.broadcast %13 : vector<1x256xf32> to vector<16x256xf32>
      %15 = arith.addf %12, %14 : vector<16x256xf32>
      %c0_14 = arith.constant 0 : index
      %c0_15 = arith.constant 0 : index
      %16 = vector.load %arg6[%c0_14, %c0_15] : memref<16x256xf32, #tpu.memory_space<vmem>>, vector<16x256xf32>
      tpu.vector_store %arg6[%c0_14, %c0_15], %15 {strides = array<i32>} : memref<16x256xf32, #tpu.memory_space<vmem>>, vector<16x256xf32>,
    } else {
    }
    return
  }
  func.func @transform_0(%arg0: i32, %arg1: i32, %arg2: i32) -> (i32, i32) {
    %c0_i32 = arith.constant 0 : i32
    return %arg0, %arg2 : i32, i32
  }
  func.func @transform_1(%arg0: i32, %arg1: i32, %arg2: i32) -> (i32, i32) {
    %c0_i32 = arith.constant 0 : i32
    return %arg2, %arg1 : i32, i32
  }
  func.func @transform_2(%arg0: i32, %arg1: i32, %arg2: i32) -> (i32, i32) {
    %c0_i32 = arith.constant 0 : i32
    %c0_i32_0 = arith.constant 0 : i32
    return %c0_i32, %arg1 : i32, i32
  }
  func.func @transform_3(%arg0: i32, %arg1: i32, %arg2: i32) -> (i32, i32) {
    %c0_i32 = arith.constant 0 : i32
    return %arg0, %arg1 : i32, i32
  }
}

</mosaic_0001>

<bundles_post_ra>
// kernel: gpt2_forward.12
= control target key start
LH: loop header
LB: loop body
LE: loop exit
PB: predicated region body
PF: predicated region fallthrough
CT: control target
= control target key end

     0   :  { %vm31_vm0 = vcmask 261120   ;;  %v384_v0 = vmov 0.0   ;;  %vm385_vm1 = vmmov 0   ;;  %vm296_vm2 = vcmask 257024   ;;  %s489_s1 = inlined_call_operand.vmem [shape: bf16[32,128], index: 1, kind: input, shape index: {}]   ;;  %s490_s3 = inlined_call_operand.vmem [shape: bf16[128,32], index: 3, kind: input, shape index: {}]   ;;  %s491_s0 = inlined_call_operand.vmem [shape: bf16[16,32], index: 0, kind: input, shape index: {}]   ;;  %s492_s2 = inlined_call_operand.vmem [shape: f32[1,128], index: 2, kind: input, shape index: {}]   ;;  %s493_s4 = inlined_call_operand.vmem [shape: f32[1,32], index: 4, kind: input, shape index: {}]   ;;  %s494_s5 = inlined_call_operand.vmem [shape: f32[1,32], index: 5, kind: input, shape index: {}]   ;;  %s495_s6 = inlined_call_operand.vmem [shape: f32[1,32], index: 6, kind: input, shape index: {}]   ;;  %s496_s7 = inlined_call_operand.vmem [shape: bf16[16,32], index: 7, kind: output, shape index: {}]  }
   0x1   :  { %339 = vmatprep.subr.bf16.mxu0 %v384_v0  ;;  %v369_v1 = vld [vmem:[%s489_s1] sm:$0xff]   ;;  %343 = vmatprep.mubr.msk.bf16.mxu0 %vm385_vm1, %v384_v0  ;;  %32 = vst.msk [vmem:[#allocation2] sm:$0xff] %vm31_vm0, %v384_v0  ;;  %33 = vst.msk [vmem:[#allocation2 + $0x8] sm:$0xff] %vm31_vm0, %v384_v0  ;;  %v370_v2 = vld [vmem:[%s489_s1 + $0x8] sm:$0xff]  }
   0x2   :  { %347 = vmatprep.subr.bf16.mxu1 %v384_v0  ;;  %363 = vmatprep.mubr.msk.bf16.mxu1 %vm385_vm1, %v384_v0  ;;  %v372_v3 = vld [vmem:[%s490_s3] sm:$0xff]   ;;  %v373_v5 = vld [vmem:[%s490_s3 + $0x8] sm:$0xff]   ;;  %v374_v6 = vld [vmem:[%s490_s3 + $0x10] sm:$0xff]  }
   0x3   :  { %340 = vmatpush3.bf16.msra.mxu0 %v369_v1  ;;  %v371_v4 = vld [vmem:[%s491_s0] sm:$0xff]   ;;  %348 = vmatpush3.bf16.msra.mxu1 %v372_v3  ;;  %v375_v7 = vld [vmem:[%s490_s3 + $0x18] sm:$0xff]   ;;  %v377_v9 = vld [vmem:[%s490_s3 + $0x28] sm:$0xff]  }
   0x4   :  { %341 = vmatprep.subr.bf16.mxu0 %v384_v0  ;;  %349 = vmatprep.subr.bf16.mxu1 %v384_v0  ;;  %v376_v8 = vld [vmem:[%s490_s3 + $0x20] sm:$0xff]   ;;  %v378_v10 = vld [vmem:[%s490_s3 + $0x30] sm:$0xff]   ;;  %v379_v11 = vld [vmem:[%s490_s3 + $0x38] sm:$0xff]  }
   0x5   :  { %v303_v12 = vld [vmem:[%s492_s2] ss:$0 sm:$0xff] }
   0x6   :  { %v324_v30 = vld [vmem:[%s491_s0] sm:$0xff]  }
   0x7   :  { %342 = vmatpush3.bf16.msra.mxu0 %v370_v2  ;;  %350 = vmatpush3.bf16.msra.mxu1 %v373_v5  ;;  %v316_v31 = vld [vmem:[%s493_s4] ss:$0 sm:$0xff]  ;;  %v325_v32 = vunpack.c.l.bf16 %v324_v30  ;;  %v326_v35 = vunpack.c.h.bf16 %v324_v30 }
   0x8   :  { %351 = vmatprep.subr.bf16.mxu1 %v384_v0  ;;  %v112_v22 = vld [vmem:[#allocation2] sm:$0xff]  ;;  %v113_v24 = vld [vmem:[#allocation2 + $0x8] sm:$0xff] }
   0x9   :  { %v317_v59 = vld [vmem:[%s494_s5] ss:$0 sm:$0xff] }
   0xa   :  { %344 = vmatmul.mubr.msk.bf16.vlgmr.msra.gmra.mrb[0].mxu0 %vm31_vm0, %v371_v4  ;;  %v318_v61 = vld [vmem:[%s495_s6] ss:$0 sm:$0xff] }
   0xb   :  { %352 = vmatpush3.bf16.msra.mxu1 %v374_v6 }
   0xc   :  { %353 = vmatprep.subr.bf16.mxu1 %v384_v0 }
   0xf   :  { %354 = vmatpush3.bf16.msra.mxu1 %v375_v7 }
  0x10   :  { %355 = vmatprep.subr.bf16.mxu1 %v384_v0 }
  0x13   :  { %356 = vmatpush3.bf16.msra.mxu1 %v376_v8 }
  0x14   :  { %357 = vmatprep.subr.bf16.mxu1 %v384_v0 }
  0x17   :  { %358 = vmatpush3.bf16.msra.mxu1 %v377_v9 }
  0x18   :  { %359 = vmatprep.subr.bf16.mxu1 %v384_v0 }
  0x1b   :  { %360 = vmatpush3.bf16.msra.mxu1 %v378_v10 }
  0x1c   :  { %361 = vmatprep.subr.bf16.mxu1 %v384_v0 }
  0x1f   :  { %362 = vmatpush3.bf16.msra.mxu1 %v379_v11 }
  0xdd   :  { %v102_v13 = vpop.f32.mrb[0].mxu0 }
  0xde   :  { %v103_v14 = vadd.f32 %v303_v12, %v102_v13  ;;  %v345_v15 = vpop.f32.mrb[1].mxu0 }
  0xdf   :  { %v105_v16 = vpop.f32.mrb[2].mxu0 }
  0xe0   :  { %v106_v17 = vadd.f32 %v303_v12, %v105_v16  ;;  %v346_v18 = vpop.f32.mrb[3].mxu0  ;;  %v109_v19 = vmax.f32 %v103_v14, 0.0 }
  0xe2   :  { %v110_v20 = vmax.f32 %v106_v17, 0.0 }
  0xe4   :  { %v111_v21 = vpack.c.bf16 %v110_v20, %v109_v19 }
  0xe6   :  { %364 = vmatmul.mubr.bf16.vlgmr.msra.gmra.mrb[0].mxu1 %v111_v21 }
 0x1b9   :  { %v212_v23 = vpop.f32.mrb[0].mxu1 }
 0x1ba   :  { %v219_v25 = vadd.f32 %v212_v23, %v112_v22  ;;  %v365_v26 = vpop.f32.mrb[1].mxu1 }
 0x1bb   :  { %v215_v27 = vpop.f32.mrb[2].mxu1 }
 0x1bc   :  { %221 = vst.msk [vmem:[#allocation2] sm:$0xff] %vm31_vm0, %v219_v25  ;;  %v220_v28 = vadd.f32 %v215_v27, %v113_v24  ;;  %v366_v29 = vpop.f32.mrb[3].mxu1 }
 0x1be   :  { %222 = vst.msk [vmem:[#allocation2 + $0x8] sm:$0xff] %vm31_vm0, %v220_v28 }
 0x1c3   :  { %v226_v33 = vld [vmem:[#allocation2] sm:$0xff] }
 0x1c4   :  { %v235_v34 = vadd.f32 %v316_v31, %v226_v33 }
 0x1c5   :  { %v227_v36 = vld [vmem:[#allocation2 + $0x8] sm:$0xff] }
 0x1c6   :  { %v241_v37 = vadd.f32 %v325_v32, %v235_v34  ;;  %v236_v38 = vadd.f32 %v316_v31, %v227_v36 }
 0x1c8   :  { %v243_v39 = vsel %vm31_vm0, %v241_v37, 0.0  ;;  %v242_v40 = vadd.f32 %v326_v35, %v236_v38 }
 0x1c9   :  { %244 = vadd.xlane.f32.xlu0 %v243_v39 }
 0x1ca   :  { %v246_v41 = vsel %vm31_vm0, %v242_v40, 0.0 }
 0x1cd   :  { %247 = vadd.xlane.f32.xlu0 %v246_v41 }
 0x256   :  { %v245_v42 = vpop.xlane.xlu0 %244 }
 0x257   :  { %v250_v43 = vmul.f32 0.03125, %v245_v42 }
 0x259   :  { %v252_v44 = vsub.f32 %v241_v37, %v250_v43 }
 0x25a   :  { %v248_v45 = vpop.xlane.xlu0 %247 }
 0x25b   :  { %v251_v46 = vmul.f32 0.03125, %v248_v45  ;;  %v254_v47 = vmul.f32 %v252_v44, %v252_v44 }
 0x25d   :  { %v253_v48 = vsub.f32 %v242_v40, %v251_v46  ;;  %v256_v49 = vsel %vm31_vm0, %v254_v47, 0.0 }
 0x25e   :  { %257 = vadd.xlane.f32.xlu1 %v256_v49 }
 0x25f   :  { %v255_v50 = vmul.f32 %v253_v48, %v253_v48 }
 0x261   :  { %v259_v51 = vsel %vm31_vm0, %v255_v50, 0.0 }
 0x262   :  { %260 = vadd.xlane.f32.xlu1 %v259_v51 }
 0x2eb   :  { %v258_v52 = vpop.xlane.xlu1 %257 }
 0x2ec   :  { %v262_v53 = vmul.f32 0.03125, %v258_v52 }
 0x2ee   :  { %v264_v54 = vadd.f32 1e-05, %v262_v53 }
 0x2ef   :  { %v261_v55 = vpop.xlane.xlu1 %260 }
 0x2f0   :  { %380 = vrsqrt.f32 %v264_v54  ;;  %v263_v56 = vmul.f32 0.03125, %v261_v55 }
 0x2f2   :  { %v265_v57 = vadd.f32 1e-05, %v263_v56 }
 0x2f4   :  { %382 = vrsqrt.f32 %v265_v57 }
 0x2fa   :  { %v381_v58 = vpop.eup %380 }
 0x2fb   :  { %v268_v60 = vmul.f32 %v381_v58, %v252_v44 }
 0x2fd   :  { %v277_v62 = vmul.f32 %v317_v59, %v268_v60 }
 0x2fe   :  { %v383_v63 = vpop.eup %382 }
 0x2ff   :  { %v286_v0 = vadd.f32 %v318_v61, %v277_v62  ;;  %v269_v1 = vmul.f32 %v383_v63, %v253_v48 }
 0x301   :  { %v321_v2 = vpack.c.bf16 %v286_v0, %v286_v0  ;;  %v278_v3 = vmul.f32 %v317_v59, %v269_v1 }
 0x303   :  { %297 = vst.msk [vmem:[%s496_s7] sm:$0xf] %vm296_vm2, %v321_v2  ;;  %v287_v4 = vadd.f32 %v318_v61, %v278_v3 }
 0x305   :  { %v322_v5 = vpack.c.bf16 %v287_v4, %v287_v4 }
 0x307   :  { %298 = vst.msk [vmem:[%s496_s7 + $0x4] sm:$0xf] %vm296_vm2, %v322_v5 }

// kernel: gpt2_forward.9
= control target key start
LH: loop header
LB: loop body
LE: loop exit
PB: predicated region body
PF: predicated region fallthrough
CT: control target
= control target key end

     0   :  { %vm16_vm0 = vcmask 785408   ;;  %v138_v0 = vmov 0.0   ;;  %vm139_vm1 = vmmov 0   ;;  %vm44_vm2 = vcmask 261120   ;;  %s174_s1 = inlined_call_operand.vmem [shape: bf16[32,96], index: 1, kind: input, shape index: {}]   ;;  %s175_s0 = inlined_call_operand.vmem [shape: bf16[16,32], index: 0, kind: input, shape index: {}]   ;;  %s176_s2 = inlined_call_operand.vmem [shape: bf16[16,96], index: 2, kind: output, shape index: {}]  }
   0x1   :  { %125 = vmatprep.subr.bf16.mxu0 %v138_v0  ;;  %v135_v1 = vld [vmem:[%s174_s1] sm:$0xff]   ;;  %129 = vmatprep.mubr.msk.bf16.mxu0 %vm139_vm1, %v138_v0  ;;  %17 = vst.msk [vmem:[#allocation2] sm:$0xff] %vm16_vm0, %v138_v0  ;;  %18 = vst.msk [vmem:[#allocation2 + $0x8] sm:$0xff] %vm16_vm0, %v138_v0  ;;  %v136_v2 = vld [vmem:[%s174_s1 + $0x8] sm:$0xff]   ;;  %vm107_vm3 = vcmask 781312  }
   0x2   :  { %126 = vmatpush3.bf16.msra.mxu0 %v135_v1  ;;  %v137_v3 = vld [vmem:[%s175_s0] sm:$0xff]  }
   0x3   :  { %127 = vmatprep.subr.bf16.mxu0 %v138_v0 }
   0x6   :  { %128 = vmatpush3.bf16.msra.mxu0 %v136_v2 }
   0x8   :  { %v19_v4 = vld [vmem:[#allocation2] sm:$0xff]  ;;  %v20_v6 = vld [vmem:[#allocation2 + $0x8] sm:$0xff] }
   0x9   :  { %130 = vmatmul.mubr.msk.bf16.vlgmr.msra.gmra.mrb[0].mxu0 %vm44_vm2, %v137_v3 }
  0xdc   :  { %v82_v5 = vpop.f32.mrb[0].mxu0 }
  0xdd   :  { %v89_v7 = vadd.f32 %v82_v5, %v19_v4  ;;  %v131_v8 = vpop.f32.mrb[1].mxu0 }
  0xde   :  { %v85_v9 = vpop.f32.mrb[2].mxu0 }
  0xdf   :  { %92 = vst.msk [vmem:[#allocation2] sm:$0xff] %vm16_vm0, %v89_v7  ;;  %v90_v10 = vadd.f32 %v85_v9, %v20_v6  ;;  %v132_v11 = vpop.f32.mrb[3].mxu0 }
  0xe1   :  { %93 = vst.msk [vmem:[#allocation2 + $0x8] sm:$0xff] %vm16_vm0, %v90_v10 }
  0xe6   :  { %v97_v12 = vld [vmem:[#allocation2] sm:$0xff] }
  0xe7   :  { %v120_v13 = vpack.c.bf16 %v97_v12, %v97_v12 }
  0xe8   :  { %v98_v14 = vld [vmem:[#allocation2 + $0x8] sm:$0xff] }
  0xe9   :  { %108 = vst.msk [vmem:[%s176_s2] sm:$0xf] %vm107_vm3, %v120_v13  ;;  %v121_v15 = vpack.c.bf16 %v98_v14, %v98_v14 }
  0xeb   :  { %109 = vst.msk [vmem:[%s176_s2 + $0x4] sm:$0xf] %vm107_vm3, %v121_v15 }

// kernel: gpt2_forward.11
= control target key start
LH: loop header
LB: loop body
LE: loop exit
PB: predicated region body
PF: predicated region fallthrough
CT: control target
= control target key end

     0   :  { %vm28_vm0 = vcmask 261120   ;;  %v220_v0 = vmov 0.0   ;;  %vm221_vm1 = vmmov 0   ;;  %vm178_vm2 = vcmask 257024   ;;  %s293_s1 = inlined_call_operand.vmem [shape: bf16[32,32], index: 1, kind: input, shape index: {}]   ;;  %s294_s0 = inlined_call_operand.vmem [shape: bf16[16,32], index: 0, kind: input, shape index: {}]   ;;  %s295_s3 = inlined_call_operand.vmem [shape: bf16[16,32], index: 3, kind: input, shape index: {}]   ;;  %s296_s2 = inlined_call_operand.vmem [shape: f32[1,32], index: 2, kind: input, shape index: {}]   ;;  %s297_s4 = inlined_call_operand.vmem [shape: f32[1,32], index: 4, kind: input, shape index: {}]   ;;  %s298_s5 = inlined_call_operand.vmem [shape: f32[1,32], index: 5, kind: input, shape index: {}]   ;;  %s299_s6 = inlined_call_operand.vmem [shape: bf16[16,32], index: 6, kind: output, shape index: {}]  }
   0x1   :  { %203 = vmatprep.subr.bf16.mxu0 %v220_v0  ;;  %v213_v1 = vld [vmem:[%s293_s1] sm:$0xff]   ;;  %207 = vmatprep.mubr.msk.bf16.mxu0 %vm221_vm1, %v220_v0  ;;  %29 = vst.msk [vmem:[#allocation2] sm:$0xff] %vm28_vm0, %v220_v0  ;;  %30 = vst.msk [vmem:[#allocation2 + $0x8] sm:$0xff] %vm28_vm0, %v220_v0  ;;  %v214_v2 = vld [vmem:[%s293_s1 + $0x8] sm:$0xff]  }
   0x2   :  { %204 = vmatpush3.bf16.msra.mxu0 %v213_v1  ;;  %v215_v3 = vld [vmem:[%s294_s0] sm:$0xff]  }
   0x3   :  { %205 = vmatprep.subr.bf16.mxu0 %v220_v0  ;;  %v197_v12 = vld [vmem:[%s295_s3] sm:$0xff]  }
   0x4   :  { %v189_v13 = vld [vmem:[%s296_s2] ss:$0 sm:$0xff]  ;;  %v198_v14 = vunpack.c.l.bf16 %v197_v12  ;;  %v199_v17 = vunpack.c.h.bf16 %v197_v12 }
   0x5   :  { %v190_v41 = vld [vmem:[%s297_s4] ss:$0 sm:$0xff] }
   0x6   :  { %206 = vmatpush3.bf16.msra.mxu0 %v214_v2  ;;  %v191_v43 = vld [vmem:[%s298_s5] ss:$0 sm:$0xff] }
   0x8   :  { %v31_v4 = vld [vmem:[#allocation2] sm:$0xff]  ;;  %v32_v6 = vld [vmem:[#allocation2 + $0x8] sm:$0xff] }
   0x9   :  { %208 = vmatmul.mubr.msk.bf16.vlgmr.msra.gmra.mrb[0].mxu0 %vm28_vm0, %v215_v3 }
  0xdc   :  { %v94_v5 = vpop.f32.mrb[0].mxu0 }
  0xdd   :  { %v101_v7 = vadd.f32 %v94_v5, %v31_v4  ;;  %v209_v8 = vpop.f32.mrb[1].mxu0 }
  0xde   :  { %v97_v9 = vpop.f32.mrb[2].mxu0 }
  0xdf   :  { %103 = vst.msk [vmem:[#allocation2] sm:$0xff] %vm28_vm0, %v101_v7  ;;  %v102_v10 = vadd.f32 %v97_v9, %v32_v6  ;;  %v210_v11 = vpop.f32.mrb[3].mxu0 }
  0xe1   :  { %104 = vst.msk [vmem:[#allocation2 + $0x8] sm:$0xff] %vm28_vm0, %v102_v10 }
  0xe6   :  { %v108_v15 = vld [vmem:[#allocation2] sm:$0xff] }
  0xe7   :  { %v117_v16 = vadd.f32 %v189_v13, %v108_v15 }
  0xe8   :  { %v109_v18 = vld [vmem:[#allocation2 + $0x8] sm:$0xff] }
  0xe9   :  { %v123_v19 = vadd.f32 %v198_v14, %v117_v16  ;;  %v118_v20 = vadd.f32 %v189_v13, %v109_v18 }
  0xeb   :  { %v125_v21 = vsel %vm28_vm0, %v123_v19, 0.0  ;;  %v124_v22 = vadd.f32 %v199_v17, %v118_v20 }
  0xec   :  { %126 = vadd.xlane.f32.xlu0 %v125_v21 }
  0xed   :  { %v128_v23 = vsel %vm28_vm0, %v124_v22, 0.0 }
  0xf0   :  { %129 = vadd.xlane.f32.xlu0 %v128_v23 }
 0x179   :  { %v127_v24 = vpop.xlane.xlu0 %126 }
 0x17a   :  { %v132_v25 = vmul.f32 0.03125, %v127_v24 }
 0x17c   :  { %v134_v26 = vsub.f32 %v123_v19, %v132_v25 }
 0x17d   :  { %v130_v27 = vpop.xlane.xlu0 %129 }
 0x17e   :  { %v133_v28 = vmul.f32 0.03125, %v130_v27  ;;  %v136_v29 = vmul.f32 %v134_v26, %v134_v26 }
 0x180   :  { %v135_v30 = vsub.f32 %v124_v22, %v133_v28  ;;  %v138_v31 = vsel %vm28_vm0, %v136_v29, 0.0 }
 0x181   :  { %139 = vadd.xlane.f32.xlu1 %v138_v31 }
 0x182   :  { %v137_v32 = vmul.f32 %v135_v30, %v135_v30 }
 0x184   :  { %v141_v33 = vsel %vm28_vm0, %v137_v32, 0.0 }
 0x185   :  { %142 = vadd.xlane.f32.xlu1 %v141_v33 }
 0x20e   :  { %v140_v34 = vpop.xlane.xlu1 %139 }
 0x20f   :  { %v144_v35 = vmul.f32 0.03125, %v140_v34 }
 0x211   :  { %v146_v36 = vadd.f32 1e-05, %v144_v35 }
 0x212   :  { %v143_v37 = vpop.xlane.xlu1 %142 }
 0x213   :  { %216 = vrsqrt.f32 %v146_v36  ;;  %v145_v38 = vmul.f32 0.03125, %v143_v37 }
 0x215   :  { %v147_v39 = vadd.f32 1e-05, %v145_v38 }
 0x217   :  { %218 = vrsqrt.f32 %v147_v39 }
 0x21d   :  { %v217_v40 = vpop.eup %216 }
 0x21e   :  { %v150_v42 = vmul.f32 %v217_v40, %v134_v26 }
 0x220   :  { %v159_v44 = vmul.f32 %v190_v41, %v150_v42 }
 0x221   :  { %v219_v45 = vpop.eup %218 }
 0x222   :  { %v168_v46 = vadd.f32 %v191_v43, %v159_v44  ;;  %v151_v47 = vmul.f32 %v219_v45, %v135_v30 }
 0x224   :  { %v194_v48 = vpack.c.bf16 %v168_v46, %v168_v46  ;;  %v160_v49 = vmul.f32 %v190_v41, %v151_v47 }
 0x226   :  { %179 = vst.msk [vmem:[%s299_s6] sm:$0xf] %vm178_vm2, %v194_v48  ;;  %v169_v50 = vadd.f32 %v191_v43, %v160_v49 }
 0x228   :  { %v195_v51 = vpack.c.bf16 %v169_v50, %v169_v50 }
 0x22a   :  { %180 = vst.msk [vmem:[%s299_s6 + $0x4] sm:$0xf] %vm178_vm2, %v195_v51 }

// kernel: gpt2_forward.10
= control target key start
LH: loop header
LB: loop body
LE: loop exit
PB: predicated region body
PF: predicated region fallthrough
CT: control target
= control target key end

     0   :  { %s1508_s12 = smov 0   ;;  %s1510_s13 = smov 0   ;;  %s1710_s0 = inlined_call_operand.vmem [shape: bf16[2,8,3,4,8], index: 0, kind: input, shape index: {}, may-alias: {0,1,2}]   ;;  %s1711_s1 = inlined_call_operand.vmem [shape: bf16[2,8,3,4,8], index: 1, kind: input, shape index: {}, may-alias: {0,1,2}]   ;;  %s1712_s2 = inlined_call_operand.vmem [shape: bf16[2,8,3,4,8], index: 2, kind: input, shape index: {}, may-alias: {0,1,2}]   ;;  %s1713_s3 = inlined_call_operand.vmem [shape: bf16[2,4,8,8], index: 3, kind: output, shape index: {}]  }
   0x1   :  { %s1512_s14 = smov 0   ;;  %s1514_s15 = smov 0  }
   0x2   :  { %s1516_s16 = smov 0  }
   0x3 LB: > { %s25_s17 = sadd.s32 1, %s1480_s15  ;;  %p41_p1 = scmp.ne.s32.totalorder %s1472_s13, %s1468_s12  ;;  %s1484_s16 = sphi %s1516_s16, %s13_s16   ;;  %s1480_s15 = sphi %s1514_s15, %s1718_s15   ;;  %s1476_s14 = sphi %s1512_s14, %s1717_s14   ;;  %s1472_s13 = sphi %s1510_s13, %s1716_s13   ;;  %s1468_s12 = sphi %s1508_s12, %s1715_s12  }
   0x4   : > { %p27_p0 = scmp.ge.s32.totalorder %s25_s17, 2  ;;  %p42_p2 = scmp.eq.s32.totalorder %s1484_s16, 0 }
   0x5   : > { %s34_s20 = sadd.s32 1, %s1472_s13  ;;  %p1281_p5 = scmp.ge.s32.totalorder %s1484_s16, 2 }
   0x6   : > { %s1720_s17 = smov (%p27_p0, %s25_s17), 0  ;;  %p1539_p3 = por %p42_p2, %p41_p1 }
   0x7   : > { %s29_s19 = ssub.s32 %s1480_s15, %s1720_s17  ;;  %147 = sbr.rel (%p1281_p5) target bundleno = 44 (0x2c), region = 16 }
   0x8   : > { %p32_p4 = scmp.eq.s32.totalorder %s29_s19, 0 }
   0xa   : > { %s1547_s21 = scalar_select %p32_p4, %s1472_s13, %s34_s20  }
   0xe   : > { %150 = sbr.rel (!%p1539_p3) target bundleno = 24 (0x18), region = 20  ;;  %s152_s22 = sand.u32 (%p1539_p3), 1, %s1472_s13  }
   0xf   : > { %s1385_s23 = smul.u32 (%p1539_p3), 48, %s1480_s15  ;;  %s1282_s24 = sshll.u32 (%p1539_p3), %s152_s22, 4 }
  0x10   : > { %s154_s28 = scalar_lea.vmem (%p1539_p3), [#allocation2], %s1282_s24 }
  0x11   : > { %s158_s27 = scalar_lea.vmem (%p1539_p3), %s1710_s0, %s1385_s23 }
  0x12   : > { %v174_v0 = vld [vmem:[%s158_s27] sm:$0x3] (%p1539_p3)  ;;  %v176_v1 = vld [vmem:[%s158_s27 + $0x6] sm:$0x3] (%p1539_p3)  ;;  %v178_v2 = vld [vmem:[%s158_s27 + $0xc] sm:$0x3] (%p1539_p3) }
  0x13   : > { %175 = vst [vmem:[%s154_s28] sm:$0x3] (%p1539_p3), %v174_v0  ;;  %177 = vst [vmem:[%s154_s28 + $0x2] sm:$0x3] (%p1539_p3), %v176_v1  ;;  %v180_v3 = vld [vmem:[%s158_s27 + $0x12] sm:$0x3] (%p1539_p3) }
  0x14   : > { %179 = vst [vmem:[%s154_s28 + $0x4] sm:$0x3] (%p1539_p3), %v178_v2  ;;  %v182_v4 = vld [vmem:[%s158_s27 + $0x18] sm:$0x3] (%p1539_p3)  ;;  %v184_v5 = vld [vmem:[%s158_s27 + $0x1e] sm:$0x3] (%p1539_p3) }
  0x15   : > { %181 = vst [vmem:[%s154_s28 + $0x6] sm:$0x3] %v180_v3  ;;  %183 = vst [vmem:[%s154_s28 + $0x8] sm:$0x3] %v182_v4  ;;  %v186_v6 = vld [vmem:[%s158_s27 + $0x24] sm:$0x3] }
  0x16   : > { %185 = vst [vmem:[%s154_s28 + $0xa] sm:$0x3] %v184_v5  ;;  %v188_v7 = vld [vmem:[%s158_s27 + $0x2a] sm:$0x3]  ;;  %187 = vst [vmem:[%s154_s28 + $0xc] sm:$0x3] %v186_v6 }
  0x17   : > { %189 = vst [vmem:[%s154_s28 + $0xe] sm:$0x3] %v188_v7 }
  0x18 PF: > { %228 = sbr.rel (!%p1539_p3) target bundleno = 34 (0x22), region = 61  ;;  %s230_s29 = sand.u32 (%p1539_p3), 1, %s1472_s13  }
  0x19   : > { %s1285_s30 = smul.u32 (%p1539_p3), 48, %s1480_s15  ;;  %s1284_s4 = sshll.u32 (%p1539_p3), %s230_s29, 4 }
  0x1a   : > { %s232_s8 = scalar_lea.vmem (%p1539_p3), [#allocation3], %s1284_s4 }
  0x1b   : > { %s1189_s7 = scalar_lea.vmem (%p1539_p3), %s1711_s1, %s1285_s30 }
  0x1c   : > { %v1286_v8 = vld [vmem:[%s1189_s7 + $0x2] sm:$0x3] (%p1539_p3)  ;;  %v1287_v9 = vld [vmem:[%s1189_s7 + $0x8] sm:$0x3] (%p1539_p3)  ;;  %v1288_v10 = vld [vmem:[%s1189_s7 + $0xe] sm:$0x3] (%p1539_p3) }
  0x1d   : > { %253 = vst [vmem:[%s232_s8] sm:$0x3] (%p1539_p3), %v1286_v8  ;;  %255 = vst [vmem:[%s232_s8 + $0x2] sm:$0x3] (%p1539_p3), %v1287_v9  ;;  %v1289_v11 = vld [vmem:[%s1189_s7 + $0x14] sm:$0x3] (%p1539_p3) }
  0x1e   : > { %257 = vst [vmem:[%s232_s8 + $0x4] sm:$0x3] (%p1539_p3), %v1288_v10  ;;  %v1290_v12 = vld [vmem:[%s1189_s7 + $0x1a] sm:$0x3] (%p1539_p3)  ;;  %v1291_v13 = vld [vmem:[%s1189_s7 + $0x20] sm:$0x3] (%p1539_p3) }
  0x1f   : > { %259 = vst [vmem:[%s232_s8 + $0x6] sm:$0x3] %v1289_v11  ;;  %261 = vst [vmem:[%s232_s8 + $0x8] sm:$0x3] %v1290_v12  ;;  %v1292_v14 = vld [vmem:[%s1189_s7 + $0x26] sm:$0x3] }
  0x20   : > { %263 = vst [vmem:[%s232_s8 + $0xa] sm:$0x3] %v1291_v13  ;;  %v1293_v15 = vld [vmem:[%s1189_s7 + $0x2c] sm:$0x3]  ;;  %265 = vst [vmem:[%s232_s8 + $0xc] sm:$0x3] %v1292_v14 }
  0x21   : > { %267 = vst [vmem:[%s232_s8 + $0xe] sm:$0x3] %v1293_v15 }
  0x22 PF: > { %306 = sbr.rel (!%p1539_p3) target bundleno = 44 (0x2c), region = 102  ;;  %s308_s9 = sand.u32 (%p1539_p3), 1, %s1472_s13  }
  0x23   : > { %s1295_s10 = smul.u32 (%p1539_p3), 48, %s1480_s15  ;;  %s1294_s11 = sshll.u32 (%p1539_p3), %s308_s9, 4 }
  0x24   : > { %s310_s23 = scalar_lea.vmem (%p1539_p3), [#allocation4], %s1294_s11 }
  0x25   : > { %s1195_s22 = scalar_lea.vmem (%p1539_p3), %s1712_s2, %s1295_s10 }
  0x26   : > { %v1296_v16 = vld [vmem:[%s1195_s22 + $0x4] sm:$0x3] (%p1539_p3)  ;;  %v1297_v17 = vld [vmem:[%s1195_s22 + $0xa] sm:$0x3] (%p1539_p3)  ;;  %v1298_v18 = vld [vmem:[%s1195_s22 + $0x10] sm:$0x3] (%p1539_p3) }
  0x27   : > { %331 = vst [vmem:[%s310_s23] sm:$0x3] (%p1539_p3), %v1296_v16  ;;  %333 = vst [vmem:[%s310_s23 + $0x2] sm:$0x3] (%p1539_p3), %v1297_v17  ;;  %v1299_v19 = vld [vmem:[%s1195_s22 + $0x16] sm:$0x3] (%p1539_p3) }
  0x28   : > { %335 = vst [vmem:[%s310_s23 + $0x4] sm:$0x3] (%p1539_p3), %v1298_v18  ;;  %v1300_v20 = vld [vmem:[%s1195_s22 + $0x1c] sm:$0x3] (%p1539_p3)  ;;  %v1301_v21 = vld [vmem:[%s1195_s22 + $0x22] sm:$0x3] (%p1539_p3) }
  0x29   : > { %337 = vst [vmem:[%s310_s23 + $0x6] sm:$0x3] %v1299_v19  ;;  %339 = vst [vmem:[%s310_s23 + $0x8] sm:$0x3] %v1300_v20  ;;  %v1302_v22 = vld [vmem:[%s1195_s22 + $0x28] sm:$0x3] }
  0x2a   : > { %341 = vst [vmem:[%s310_s23 + $0xa] sm:$0x3] %v1301_v21  ;;  %v1303_v23 = vld [vmem:[%s1195_s22 + $0x2e] sm:$0x3]  ;;  %343 = vst [vmem:[%s310_s23 + $0xc] sm:$0x3] %v1302_v22 }
  0x2b   : > { %345 = vst [vmem:[%s310_s23 + $0xe] sm:$0x3] %v1303_v23 }
  0x2c PF: > { %p1304_p6 = scmp.ge.s32.totalorder %s1484_s16, 1  ;;  %p383_p7 = scmp.lt.s32.totalorder %s1484_s16, 3 }
  0x2e   : > { %p384_p8 = pnand %p1304_p6, %p383_p7 }
  0x2f   : > { %s390_s18 = sand.u32 (!%p384_p8), 1, %s1468_s12   ;;  %v1486_v24 = vmov (!%p384_p8), 0.0   ;;  %vm474_vm0 = vcmask (!%p384_p8), 64512   ;;  %vm1487_vm1 = vmmov (!%p384_p8), 0   ;;  %vm851_vm2 = vcmask (!%p384_p8), 27648   ;;  %p440_p9 = scmp.lt.s32.totalorder (!%p384_p8), %s1476_s14, 1 }
  0x30   : > { %387 = sbr.rel (%p384_p8) target bundleno = 770 (0x302), region = 143  ;;  %1337 = vmatprep.subr.bf16.mxu0 (!%p384_p8), %v1486_v24  ;;  %1343 = vmatprep.subr.bf16.mxu1 (!%p384_p8), %v1486_v24  ;;  %s1574_s24 = sshll.u32 (!%p384_p8), %s390_s18, 4  ;;  %vm1046_vm3 = vcmask (!%p384_p8), 1041409   ;;  %vm1048_vm4 = vcmask (!%p384_p8), 1042434   ;;  %vm947_vm5 = vcmask (!%p384_p8), 60416   ;;  %vm1050_vm6 = vcmask (!%p384_p8), 1043459  }
  0x31   : > { %1339 = vmatprep.mubr.msk.bf16.mxu0 (!%p384_p8), %vm1487_vm1, %v1486_v24  ;;  %1345 = vmatprep.mubr.msk.bf16.mxu1 (!%p384_p8), %vm1487_vm1, %v1486_v24  ;;  %s1579_s25 = scalar_lea.vmem (!%p384_p8), [#allocation3], %s1574_s24  ;;  %s1588_s12 = scalar_lea.vmem (!%p384_p8), [#allocation2], %s1574_s24  ;;  %vm1052_vm7 = vcmask (!%p384_p8), 1044484   ;;  %vm1054_vm8 = vcmask (!%p384_p8), 1045509   ;;  %vm1056_vm9 = vcmask (!%p384_p8), 1046534   ;;  %vm1058_vm10 = vcmask (!%p384_p8), 1047559  }
  0x32   : > { %v458_v25 = vld [vmem:[%s1579_s25] sm:$0x3] (!%p384_p8)  ;;  %v459_v26 = vld [vmem:[%s1579_s25 + $0x2] sm:$0x3] (!%p384_p8)  ;;  %v460_v29 = vld [vmem:[%s1579_s25 + $0x4] sm:$0x3] (!%p384_p8) }
  0x33   : > { %v479_v27 = vsel (!%p384_p8), %vm474_vm0, %v458_v25, 0  ;;  %v525_v28 = vsel (!%p384_p8), %vm474_vm0, %v459_v26, 0  ;;  %v461_v30 = vld [vmem:[%s1579_s25 + $0x6] sm:$0x3] (!%p384_p8)  ;;  %v450_v31 = vld [vmem:[%s1588_s12] sm:$0x3] (!%p384_p8) }
  0x34   : > { %1338 = vmatpush3.bf16.xpose.msra.mxu0 (!%p384_p8), %v479_v27  ;;  %1344 = vmatpush3.bf16.xpose.msra.mxu1 (!%p384_p8), %v525_v28  ;;  %v451_v32 = vld [vmem:[%s1588_s12 + $0x2] sm:$0x3] (!%p384_p8)  ;;  %v571_v33 = vsel (!%p384_p8), %vm474_vm0, %v460_v29, 0  ;;  %v617_v34 = vsel (!%p384_p8), %vm474_vm0, %v461_v30, 0  ;;  %v462_v35 = vld [vmem:[%s1579_s25 + $0x8] sm:$0x3] (!%p384_p8) }
  0x35   : > { %1349 = vmatprep.subr.bf16.mxu0 (!%p384_p8), %v1486_v24  ;;  %1355 = vmatprep.subr.bf16.mxu1 (!%p384_p8), %v1486_v24  ;;  %v463_v36 = vld [vmem:[%s1579_s25 + $0xa] sm:$0x3] (!%p384_p8)  ;;  %v452_v37 = vld [vmem:[%s1588_s12 + $0x4] sm:$0x3] (!%p384_p8)  ;;  %v453_v38 = vld [vmem:[%s1588_s12 + $0x6] sm:$0x3] (!%p384_p8) }
  0x36   : > { %v663_v39 = vsel (!%p384_p8), %vm474_vm0, %v462_v35, 0  ;;  %v709_v40 = vsel (!%p384_p8), %vm474_vm0, %v463_v36, 0  ;;  %v464_v41 = vld [vmem:[%s1579_s25 + $0xc] sm:$0x3] (!%p384_p8)  ;;  %v465_v42 = vld [vmem:[%s1579_s25 + $0xe] sm:$0x3] (!%p384_p8) }
  0x37   : > { %v454_v43 = vld [vmem:[%s1588_s12 + $0x8] sm:$0x3]  ;;  %v455_v44 = vld [vmem:[%s1588_s12 + $0xa] sm:$0x3]  ;;  %v755_v45 = vsel %vm474_vm0, %v464_v41, 0  ;;  %v801_v46 = vsel %vm474_vm0, %v465_v42, 0 }
  0x38   : > { %v456_v47 = vld [vmem:[%s1588_s12 + $0xc] sm:$0x3]  ;;  %v457_v48 = vld [vmem:[%s1588_s12 + $0xe] sm:$0x3]  ;;  %s1650_s26 = scalar_lea.vmem [#allocation4], %s1574_s24  ;;  %s1722_s14 = smov (!%p440_p9, %s1476_s14), 1 }
  0x39   : > { %s1320_s27 = sshll.u32 %s1722_s14, 4 }
  0x3a   : > { %s447_s30 = scalar_lea.vmem %s1713_s3, %s1320_s27 }
  0x3b   : > { %1340 = vmatmul.mubr.msk.bf16.vlgmr.msra.gmra.mrb[0].mxu0 %vm474_vm0, %v450_v31  ;;  %1346 = vmatmul.mubr.msk.bf16.vlgmr.msra.gmra.mrb[0].mxu1 %vm474_vm0, %v451_v32 }
  0x3c   : > { %1350 = vmatpush3.bf16.xpose.msra.mxu0 %v571_v33  ;;  %1356 = vmatpush3.bf16.xpose.msra.mxu1 %v617_v34 }
  0x3d   : > { %1351 = vmatprep.mubr.msk.bf16.mxu0 %vm1487_vm1, %v1486_v24  ;;  %1357 = vmatprep.mubr.msk.bf16.mxu1 %vm1487_vm1, %v1486_v24 }
  0x3e   : > { %1361 = vmatprep.subr.bf16.mxu0 %v1486_v24  ;;  %1367 = vmatprep.subr.bf16.mxu1 %v1486_v24 }
  0x43   : > { %1352 = vmatmul.mubr.msk.bf16.vlgmr.msra.gmra.mrb[4].mxu0 %vm474_vm0, %v452_v37  ;;  %1358 = vmatmul.mubr.msk.bf16.vlgmr.msra.gmra.mrb[4].mxu1 %vm474_vm0, %v453_v38 }
  0x44   : > { %1362 = vmatpush3.bf16.xpose.msra.mxu0 %v663_v39  ;;  %1368 = vmatpush3.bf16.xpose.msra.mxu1 %v709_v40 }
  0x45   : > { %1363 = vmatprep.mubr.msk.bf16.mxu0 %vm1487_vm1, %v1486_v24  ;;  %1369 = vmatprep.mubr.msk.bf16.mxu1 %vm1487_vm1, %v1486_v24 }
  0x46   : > { %1373 = vmatprep.subr.bf16.mxu0 %v1486_v24  ;;  %1379 = vmatprep.subr.bf16.mxu1 %v1486_v24 }
  0x4b   : > { %1364 = vmatmul.mubr.msk.bf16.vlgmr.msra.gmra.mrb[8].mxu0 %vm474_vm0, %v454_v43  ;;  %1370 = vmatmul.mubr.msk.bf16.vlgmr.msra.gmra.mrb[8].mxu1 %vm474_vm0, %v455_v44 }
  0x4c   : > { %1374 = vmatpush3.bf16.xpose.msra.mxu0 %v755_v45  ;;  %1380 = vmatpush3.bf16.xpose.msra.mxu1 %v801_v46 }
  0x4d   : > { %1375 = vmatprep.mubr.msk.bf16.mxu0 %vm1487_vm1, %v1486_v24  ;;  %1381 = vmatprep.mubr.msk.bf16.mxu1 %vm1487_vm1, %v1486_v24 }
  0x53   : > { %1376 = vmatmul.mubr.msk.bf16.vlgmr.msra.gmra.mrb[12].mxu0 %vm474_vm0, %v456_v47  ;;  %1382 = vmatmul.mubr.msk.bf16.vlgmr.msra.gmra.mrb[12].mxu1 %vm474_vm0, %v457_v48 }
 0x10e   : > { %v515_v49 = vpop.f32.mrb[0].mxu0  ;;  %v561_v50 = vpop.f32.mrb[0].mxu1 }
 0x10f   : > { %v1341_v51 = vpop.f32.mrb[1].mxu0  ;;  %v1347_v52 = vpop.f32.mrb[1].mxu1  ;;  %v843_v1 = vmul.f32 0.35355338, %v515_v49  ;;  %v844_v2 = vmul.f32 0.35355338, %v561_v50 }
 0x110   : > { %v518_v53 = vpop.f32.mrb[2].mxu0  ;;  %v564_v54 = vpop.f32.mrb[2].mxu1 }
 0x111   : > { %v1342_v55 = vpop.f32.mrb[3].mxu0  ;;  %v1348_v56 = vpop.f32.mrb[3].mxu1  ;;  %v852_v11 = vsel %vm851_vm2, %v843_v1, -inf  ;;  %v853_v12 = vsel %vm851_vm2, %v844_v2, -inf }
 0x116   : > { %v607_v57 = vpop.f32.mrb[4].mxu0  ;;  %v653_v58 = vpop.f32.mrb[4].mxu1 }
 0x117   : > { %v1353_v59 = vpop.f32.mrb[5].mxu0  ;;  %v1359_v60 = vpop.f32.mrb[5].mxu1  ;;  %v845_v20 = vmul.f32 0.35355338, %v607_v57  ;;  %v846_v21 = vmul.f32 0.35355338, %v653_v58 }
 0x118   : > { %v610_v61 = vpop.f32.mrb[6].mxu0  ;;  %v656_v62 = vpop.f32.mrb[6].mxu1 }
 0x119   : > { %v1354_v63 = vpop.f32.mrb[7].mxu0  ;;  %v1360_v0 = vpop.f32.mrb[7].mxu1  ;;  %v854_v30 = vsel %vm851_vm2, %v845_v20, -inf  ;;  %v855_v31 = vsel %vm851_vm2, %v846_v21, -inf }
 0x11e   : > { %v699_v3 = vpop.f32.mrb[8].mxu0  ;;  %v745_v4 = vpop.f32.mrb[8].mxu1 }
 0x11f   : > { %v847_v5 = vmul.f32 0.35355338, %v699_v3  ;;  %v848_v6 = vmul.f32 0.35355338, %v745_v4  ;;  %v1365_v7 = vpop.f32.mrb[9].mxu0  ;;  %v1371_v8 = vpop.f32.mrb[9].mxu1 }
 0x120   : > { %v702_v9 = vpop.f32.mrb[10].mxu0  ;;  %v748_v10 = vpop.f32.mrb[10].mxu1 }
 0x121   : > { %v856_v13 = vsel %vm851_vm2, %v847_v5, -inf  ;;  %v858_v14 = vsel %vm851_vm2, %v848_v6, -inf  ;;  %v1366_v15 = vpop.f32.mrb[11].mxu0  ;;  %v1372_v16 = vpop.f32.mrb[11].mxu1 }
 0x122   : > { %v857_v17 = vmax.f32 %v852_v11, %v856_v13  ;;  %v859_v18 = vmax.f32 %v853_v12, %v858_v14 }
 0x124   : > { %v864_v19 = vmax.f32 %v857_v17, %v859_v18 }
 0x126   : > { %v791_v22 = vpop.f32.mrb[12].mxu0  ;;  %v837_v23 = vpop.f32.mrb[12].mxu1 }
 0x127   : > { %v849_v24 = vmul.f32 0.35355338, %v791_v22  ;;  %v850_v25 = vmul.f32 0.35355338, %v837_v23  ;;  %v1377_v26 = vpop.f32.mrb[13].mxu0  ;;  %v1383_v27 = vpop.f32.mrb[13].mxu1 }
 0x128   : > { %v794_v28 = vpop.f32.mrb[14].mxu0  ;;  %v840_v29 = vpop.f32.mrb[14].mxu1 }
 0x129   : > { %v860_v32 = vsel %vm851_vm2, %v849_v24, -inf  ;;  %v862_v33 = vsel %vm851_vm2, %v850_v25, -inf  ;;  %v1378_v34 = vpop.f32.mrb[15].mxu0  ;;  %v1384_v35 = vpop.f32.mrb[15].mxu1 }
 0x12a   : > { %v861_v36 = vmax.f32 %v854_v30, %v860_v32  ;;  %v863_v37 = vmax.f32 %v855_v31, %v862_v33  ;;  %v1012_v32 = vlaneseq }
 0x12c   : > { %v865_v38 = vmax.f32 %v861_v36, %v863_v37  ;;  %v1013_v33 = vand.u32 127, %v1012_v32  ;;  %v1646_v34 = vshrl.u32 %v1012_v32, 7 }
 0x12e   : > { %v866_v39 = vmax.f32 %v864_v19, %v865_v38  ;;  %v1016_v37 = vsub.s32 %v1013_v33, %v1646_v34  ;;  %v466_v38 = vld [vmem:[%s1650_s26] sm:$0x3] }
 0x130   : > { %v867_v40 = vsub.f32 %v843_v1, %v866_v39  ;;  %v868_v41 = vsub.f32 %v844_v2, %v866_v39  ;;  %v870_v42 = vsub.f32 %v846_v21, %v866_v39  ;;  %v871_v43 = vsub.f32 %v847_v5, %v866_v39 }
 0x131   : > { %v872_v44 = vsub.f32 %v848_v6, %v866_v39  ;;  %v873_v45 = vsub.f32 %v849_v24, %v866_v39  ;;  %v874_v46 = vsub.f32 %v850_v25, %v866_v39  ;;  %v869_v47 = vsub.f32 %v845_v20, %v866_v39  ;;  %v467_v39 = vld [vmem:[%s1650_s26 + $0x2] sm:$0x3] }
 0x132   : > { %v875_v48 = vmul.f32 1.442695, %v867_v40  ;;  %v877_v49 = vmul.f32 1.442695, %v868_v41  ;;  %v881_v51 = vmul.f32 1.442695, %v870_v42  ;;  %v939_v41 = vunpack.c.l.bf16 %v466_v38 }
 0x133   : > { %v879_v50 = vmul.f32 1.442695, %v869_v47  ;;  %v883_v52 = vmul.f32 1.442695, %v871_v43  ;;  %v885_v53 = vmul.f32 1.442695, %v872_v44 }
 0x134   : > { %1428 = vpow2.f32 %v875_v48  ;;  %v887_v54 = vmul.f32 1.442695, %v873_v45  ;;  %v889_v55 = vmul.f32 1.442695, %v874_v46  ;;  %v468_v44 = vld [vmem:[%s1650_s26 + $0x4] sm:$0x3]  ;;  %v940_v45 = vunpack.c.l.bf16 %v467_v39 }
 0x135   : > { %1430 = vpow2.f32 %v877_v49  ;;  %v473_v38 = vld [vmem:[%s1650_s26 + $0xe] sm:$0x3] }
 0x136   : > { %1432 = vpow2.f32 %v879_v50  ;;  %v941_v50 = vunpack.c.l.bf16 %v468_v44 }
 0x137   : > { %1434 = vpow2.f32 %v881_v51 }
 0x138   : > { %1436 = vpow2.f32 %v883_v52 }
 0x139   : > { %1438 = vpow2.f32 %v885_v53  ;;  %v469_v53 = vld [vmem:[%s1650_s26 + $0x6] sm:$0x3] }
 0x13a   : > { %1440 = vpow2.f32 %v887_v54 }
 0x13b   : > { %1442 = vpow2.f32 %v889_v55  ;;  %v948_v55 = vsel %vm947_vm5, %v939_v41, 0.0 }
 0x13e   : > { %v1429_v56 = vpop.eup %1428 }
 0x13f   : > { %v1431_v57 = vpop.eup %1430  ;;  %v891_v58 = vsel %vm851_vm2, %v1429_v56, 0.0 }
 0x140   : > { %v1433_v59 = vpop.eup %1432  ;;  %v892_v60 = vsel %vm851_vm2, %v1431_v57, 0.0 }
 0x141   : > { %v1435_v61 = vpop.eup %1434  ;;  %v893_v62 = vadd.f32 %v892_v60, %v891_v58  ;;  %v894_v63 = vsel %vm851_vm2, %v1433_v59, 0.0  ;;  %v470_v60 = vld [vmem:[%s1650_s26 + $0x8] sm:$0x3] }
 0x142   : > { %v1437_v0 = vpop.eup %1436  ;;  %v896_v2 = vsel %vm851_vm2, %v1435_v61, 0.0 }
 0x143   : > { %v895_v1 = vadd.f32 %v894_v63, %v893_v62  ;;  %v1439_v3 = vpop.eup %1438  ;;  %v898_v5 = vsel %vm851_vm2, %v1437_v0, 0.0  ;;  %v949_v63 = vrot.slane %v948_v55, 4 }
 0x144   : > { %v1441_v6 = vpop.eup %1440  ;;  %v900_v8 = vsel %vm851_vm2, %v1439_v3, 0.0 }
 0x145   : > { %v897_v4 = vadd.f32 %v896_v2, %v895_v1  ;;  %v1443_v9 = vpop.eup %1442  ;;  %v902_v11 = vsel %vm851_vm2, %v1441_v6, 0.0  ;;  %v962_v1 = vsel %vm947_vm5, %v941_v50, 0.0 }
 0x146   : > { %v904_v13 = vsel %vm851_vm2, %v1443_v9, 0.0 }
 0x147   : > { %v899_v7 = vadd.f32 %v898_v5, %v897_v4 }
 0x149   : > { %v901_v10 = vadd.f32 %v900_v8, %v899_v7  ;;  %v963_v8 = vrot.slane %v962_v1, 4 }
 0x14b   : > { %v903_v12 = vadd.f32 %v902_v11, %v901_v10  ;;  %v950_v11 = vadd.f32 %v949_v63, %v948_v55 }
 0x14d   : > { %v905_v14 = vadd.f32 %v904_v13, %v903_v12 }
 0x14f   : > { %1444 = vrcp.f32 %v905_v14 }
 0x159   : > { %v1445_v15 = vpop.eup %1444 }
 0x15a   : > { %v909_v16 = vmul.f32 %v1445_v15, %v1433_v59  ;;  %v907_v17 = vmul.f32 %v1445_v15, %v1429_v56  ;;  %v910_v18 = vmul.f32 %v1445_v15, %v1435_v61  ;;  %v908_v19 = vmul.f32 %v1445_v15, %v1431_v57 }
 0x15b   : > { %v912_v20 = vmul.f32 %v1445_v15, %v1439_v3  ;;  %v911_v21 = vmul.f32 %v1445_v15, %v1437_v0  ;;  %v914_v22 = vmul.f32 %v1445_v15, %v1443_v9  ;;  %v913_v23 = vmul.f32 %v1445_v15, %v1441_v6 }
 0x15c   : > { %v921_v24 = vsel %vm851_vm2, %v909_v16, 0.0  ;;  %v915_v25 = vsel %vm851_vm2, %v907_v17, 0.0  ;;  %v924_v26 = vsel %vm851_vm2, %v910_v18, 0.0  ;;  %v918_v27 = vsel %vm851_vm2, %v908_v19, 0.0 }
 0x15d   : > { %922 = vadd.xlane.f32.xlu1 %v921_v24  ;;  %916 = vadd.xlane.f32.xlu0 %v915_v25  ;;  %v930_v28 = vsel %vm851_vm2, %v912_v20, 0.0  ;;  %v927_v29 = vsel %vm851_vm2, %v911_v21, 0.0  ;;  %v936_v30 = vsel %vm851_vm2, %v914_v22, 0.0  ;;  %v933_v31 = vsel %vm851_vm2, %v913_v23, 0.0 }
 0x15e   : > { %v955_v56 = vsel %vm947_vm5, %v940_v45, 0.0  ;;  %v942_v61 = vunpack.c.l.bf16 %v469_v53  ;;  %v943_v6 = vunpack.c.l.bf16 %v470_v60  ;;  %v964_v16 = vadd.f32 %v963_v8, %v962_v1 }
 0x15f   : > { %v956_v0 = vrot.slane %v955_v56, 4  ;;  %v951_v17 = vrot.slane %v950_v11, 2 }
 0x160   : > { %v969_v9 = vsel %vm947_vm5, %v942_v61, 0.0  ;;  %v976_v15 = vsel %vm947_vm5, %v943_v6, 0.0  ;;  %v965_v21 = vrot.slane %v964_v16, 2 }
 0x161   : > { %925 = vadd.xlane.f32.xlu1 %v924_v26  ;;  %919 = vadd.xlane.f32.xlu0 %v918_v27  ;;  %v957_v12 = vadd.f32 %v956_v0, %v955_v56  ;;  %v970_v14 = vrot.slane %v969_v9, 4  ;;  %v977_v19 = vrot.slane %v976_v15, 4  ;;  %v952_v22 = vadd.f32 %v951_v17, %v950_v11 }
 0x162   : > { %v966_v26 = vadd.f32 %v965_v21, %v964_v16  ;;  %v1095_v11 = vsub.s32 0, %v1646_v34  ;;  %v1109_v16 = vsub.s32 2, %v1646_v34 }
 0x163   : > { %v958_v18 = vrot.slane %v957_v12, 2  ;;  %v971_v20 = vadd.f32 %v970_v14, %v969_v9  ;;  %v978_v24 = vadd.f32 %v977_v19, %v976_v15  ;;  %v953_v27 = vrot.slane %v952_v22, 1 }
 0x164   : > { %v1102_v14 = vsub.s32 1, %v1646_v34 }
 0x165   : > { %931 = vadd.xlane.f32.xlu1 %v930_v28  ;;  %928 = vadd.xlane.f32.xlu0 %v927_v29  ;;  %v959_v23 = vadd.f32 %v958_v18, %v957_v12  ;;  %v972_v25 = vrot.slane %v971_v20, 2  ;;  %v979_v29 = vrot.slane %v978_v24, 2  ;;  %v954_v32 = vadd.f32 %v953_v27, %v952_v22 }
 0x166   : > { %v1116_v18 = vsub.s32 3, %v1646_v34 }
 0x167   : > { %v960_v28 = vrot.slane %v959_v23, 1 }
 0x169   : > { %937 = vadd.xlane.f32.xlu1 %v936_v30  ;;  %934 = vadd.xlane.f32.xlu0 %v933_v31  ;;  %v973_v30 = vadd.f32 %v972_v25, %v971_v20  ;;  %v967_v31 = vrot.slane %v966_v26, 1  ;;  %v961_v33 = vadd.f32 %v960_v28, %v959_v23 }
 0x16b   : > { %v974_v41 = vrot.slane %v973_v30, 1 }
 0x1ea   : > { %v923_v35 = vpop.xlane.xlu1 %922  ;;  %v917_v36 = vpop.xlane.xlu0 %916 }
 0x1eb   : > { %v1017_v43 = vrot.slane %v917_v36, %v1016_v37  ;;  %v1025_v47 = vrot.slane %v923_v35, %v1016_v37  ;;  %v471_v35 = vld [vmem:[%s1650_s26 + $0xa] sm:$0x3]  ;;  %v472_v36 = vld [vmem:[%s1650_s26 + $0xc] sm:$0x3] }
 0x1ec   : > { %v944_v39 = vunpack.c.l.bf16 %v471_v35 }
 0x1ee   : > { %v926_v40 = vpop.xlane.xlu1 %925  ;;  %v920_v42 = vpop.xlane.xlu0 %919  ;;  %v983_v44 = vsel %vm947_vm5, %v944_v39, 0.0 }
 0x1ef   : > { %v1021_v46 = vrot.slane %v920_v42, %v1016_v37  ;;  %v1029_v48 = vrot.slane %v926_v40, %v1016_v37  ;;  %v945_v40 = vunpack.c.l.bf16 %v472_v36  ;;  %v946_v42 = vunpack.c.l.bf16 %v473_v38 }
 0x1f1   : > { %v1047_v49 = vsel %vm1046_vm3, %v1021_v46, %v1017_v43  ;;  %v968_v43 = vadd.f32 %v967_v31, %v966_v26  ;;  %v990_v45 = vsel %vm947_vm5, %v945_v40, 0.0  ;;  %v1129_v46 = vsel %vm1046_vm3, %v961_v33, %v954_v32 }
 0x1f2   : > { %v1049_v51 = vsel %vm1048_vm4, %v1025_v47, %v1047_v49  ;;  %v932_v52 = vpop.xlane.xlu1 %931  ;;  %v929_v54 = vpop.xlane.xlu0 %928  ;;  %v984_v47 = vrot.slane %v983_v44, 4  ;;  %v997_v49 = vsel %vm947_vm5, %v946_v42, 0.0 }
 0x1f3   : > { %v1051_v57 = vsel %vm1050_vm6, %v1029_v48, %v1049_v51  ;;  %v1033_v58 = vrot.slane %v929_v54, %v1016_v37  ;;  %v1037_v59 = vrot.slane %v932_v52, %v1016_v37  ;;  %v991_v48 = vrot.slane %v990_v45, 4 }
 0x1f4   : > { %v998_v51 = vrot.slane %v997_v49, 4  ;;  %v975_v52 = vadd.f32 %v974_v41, %v973_v30  ;;  %v985_v53 = vadd.f32 %v984_v47, %v983_v44  ;;  %v1130_v55 = vsel %vm1048_vm4, %v968_v43, %v1129_v46 }
 0x1f5   : > { %v1053_v62 = vsel %vm1052_vm7, %v1033_v58, %v1051_v57  ;;  %v992_v54 = vadd.f32 %v991_v48, %v990_v45 }
 0x1f6   : > { %v938_v2 = vpop.xlane.xlu1 %937  ;;  %v935_v3 = vpop.xlane.xlu0 %934  ;;  %v1055_v7 = vsel %vm1054_vm8, %v1037_v59, %v1053_v62  ;;  %v999_v56 = vadd.f32 %v998_v51, %v997_v49  ;;  %v986_v57 = vrot.slane %v985_v53, 2  ;;  %v1131_v61 = vsel %vm1050_vm6, %v975_v52, %v1130_v55 }
 0x1f7   : > { %v1045_v4 = vrot.slane %v938_v2, %v1016_v37  ;;  %v1041_v5 = vrot.slane %v935_v3, %v1016_v37  ;;  %v980_v37 = vadd.f32 %v979_v29, %v978_v24  ;;  %v993_v58 = vrot.slane %v992_v54, 2 }
 0x1f8   : > { %v1000_v60 = vrot.slane %v999_v56, 2  ;;  %v987_v62 = vadd.f32 %v986_v57, %v985_v53 }
 0x1f9   : > { %v1057_v10 = vsel %vm1056_vm9, %v1041_v5, %v1055_v7  ;;  %v981_v50 = vrot.slane %v980_v37, 1  ;;  %v994_v63 = vadd.f32 %v993_v58, %v992_v54 }
 0x1fa   : > { %v1059_v13 = vsel %vm1058_vm10, %v1045_v4, %v1057_v10  ;;  %v1001_v0 = vadd.f32 %v1000_v60, %v999_v56  ;;  %v988_v1 = vrot.slane %v987_v62, 1 }
 0x1fb   : > { %1061 = vxpose.xlu0.b32.start.end [1/1] (short) (narrow) %v1059_v13, 8  ;;  %v982_v59 = vadd.f32 %v981_v50, %v980_v37  ;;  %v995_v2 = vrot.slane %v994_v63, 1 }
 0x1fc   : > { %v1002_v4 = vrot.slane %v1001_v0, 1  ;;  %v989_v5 = vadd.f32 %v988_v1, %v987_v62 }
 0x1fd   : > { %v1132_v3 = vsel %vm1052_vm7, %v982_v59, %v1131_v61  ;;  %v996_v6 = vadd.f32 %v995_v2, %v994_v63 }
 0x1fe   : > { %v1003_v7 = vadd.f32 %v1002_v4, %v1001_v0  ;;  %v1133_v8 = vsel %vm1054_vm8, %v989_v5, %v1132_v3 }
 0x1ff   : > { %v1134_v9 = vsel %vm1056_vm9, %v996_v6, %v1133_v8 }
 0x200   : > { %v1135_v10 = vsel %vm1058_vm10, %v1003_v7, %v1134_v9 }
 0x27b   : > { %v1077_v12 = vpop.trf.xlu0 }
 0x27c   : > { %v1096_v13 = vrot.slane %v1077_v12, %v1095_v11  ;;  %v1103_v15 = vrot.slane %v1077_v12, %v1102_v14  ;;  %v1110_v17 = vrot.slane %v1077_v12, %v1109_v16  ;;  %v1117_v19 = vrot.slane %v1077_v12, %v1116_v18 }
 0x27e   : > { %1098 = vbcast.lane.b32.xlu1 %v1096_v13, 256 }
 0x282   : > { %1105 = vbcast.lane.b32.xlu1 %v1103_v15, 256 }
 0x286   : > { %1112 = vbcast.lane.b32.xlu1 %v1110_v17, 256 }
 0x28a   : > { %1119 = vbcast.lane.b32.xlu1 %v1117_v19, 256 }
 0x2f0   : > { %v1099_v20 = vpop.permute.xlu1 %1098 }
 0x2f1   : > { %v1137_v21 = vmul.f32 %v1135_v10, %v1099_v20 }
 0x2f3   : > { %v1141_v22 = vpack.c.bf16 %v1137_v21, %v1137_v21 }
 0x2f4   : > { %v1106_v23 = vpop.permute.xlu1 %1105 }
 0x2f5   : > { %1145 = vst.msk [vmem:[%s447_s30] sm:$0xf] %vm947_vm5, %v1141_v22  ;;  %v1138_v24 = vmul.f32 %v1135_v10, %v1106_v23 }
 0x2f7   : > { %v1142_v25 = vpack.c.bf16 %v1138_v24, %v1138_v24 }
 0x2f8   : > { %v1113_v26 = vpop.permute.xlu1 %1112 }
 0x2f9   : > { %1146 = vst.msk [vmem:[%s447_s30 + $0x4] sm:$0xf] %vm947_vm5, %v1142_v25  ;;  %v1139_v34 = vmul.f32 %v1135_v10, %v1113_v26 }
 0x2fb   : > { %v1143_v27 = vpack.c.bf16 %v1139_v34, %v1139_v34 }
 0x2fc   : > { %v1120_v28 = vpop.permute.xlu1 %1119 }
 0x2fd   : > { %1147 = vst.msk [vmem:[%s447_s30 + $0x8] sm:$0xf] %vm947_vm5, %v1143_v27  ;;  %v1140_v29 = vmul.f32 %v1135_v10, %v1120_v28 }
 0x2ff   : > { %v1144_v30 = vpack.c.bf16 %v1140_v29, %v1140_v29 }
 0x301   : > { %1148 = vst.msk [vmem:[%s447_s30 + $0xc] sm:$0xf] %vm947_vm5, %v1144_v30 }
 0x302 PF: > { %s13_s16 = sadd.s32 1, %s1484_s16   ;;  %s1715_s12 = smov %s1472_s13 }
 0x303   : > { %p10_p10 = scmp.ge.s32.totalorder %s13_s16, 4   ;;  %s1716_s13 = smov %s1547_s21 }
 0x304   : > { %s1717_s14 = smov %s1480_s15  ;;  %s1718_s15 = smov %s1720_s17 }
 0x305   :  { %12 = sbr.rel (!%p10_p10) target bundleno = 3 (0x3), region = 206 }

// kernel: gpt2_forward.17
= control target key start
LH: loop header
LB: loop body
LE: loop exit
PB: predicated region body
PF: predicated region fallthrough
CT: control target
= control target key end

     0   :  { %v198_v2 = vmov 0   ;;  %s252_s0 = inlined_call_operand.vmem [shape: bf16[16,32], index: 0, kind: input, shape index: {}]   ;;  %s253_s1 = inlined_call_operand.vmem [shape: bf16[32,256], index: 1, kind: input, shape index: {}]   ;;  %s254_s2 = inlined_call_operand.vmem [shape: f32[1,256], index: 2, kind: input, shape index: {}]   ;;  %s255_s3 = inlined_call_operand.hbm [shape: f32[16,256], index: 3, kind: output, shape index: {}]  }
   0x1   :  { %v167_v0 = vld [vmem:[%s253_s1 + $0x4] ss:$8 sps:$4 sm:$0xff]   ;;  %v169_v1 = vld [vmem:[%s253_s1] ss:$8 sps:$4 sm:$0xff]   ;;  %95 = vmatprep.mubr.bf16.mxu0 %v198_v2  ;;  %v170_v3 = vld [vmem:[%s253_s1 + $0x14] ss:$8 sps:$4 sm:$0xff]  }
   0x2   :  { %63 = vmatprep.subr.bf16.mxu0 %v167_v0  ;;  %v172_v4 = vld [vmem:[%s253_s1 + $0x10] ss:$8 sps:$4 sm:$0xff]  }
   0x3   :  { %64 = vmatpush1.bf16.msra.mxu0 %v169_v1 }
   0x4   :  { %8 = vsyncpa [#allocation4], 0  ;;  %65 = vmatprep.subr.bf16.mxu0 %v170_v3  ;;  %v173_v5 = vld [vmem:[%s252_s0] sm:$0xff]   ;;  %vm59_vm0 = vcmask 261120   ;;  %v123_v6 = vlaneseq  ;;  %s199_s1 = smov [#allocation3]  }
   0x5   :  { %v121_v9 = vld [vmem:[%s254_s2] sm:$0x3]  ;;  %s146_s24 = sshll.u32 %s199_s1, 4  ;;  %s147_s24 = int_to_ptr.vmem [resolvable:$true] %s146_s24 }
   0x6   :  { %v124_v7 = vshrl.u32 %v123_v6, 7  ;;  %s174_s0 = scalar_lea.vmem %s147_s24, 512  ;;  %p179_p1 = scmp.lt.s32.totalorder %s147_s24, %s147_s24 }
   0x7   :  { %66 = vmatpush1.bf16.msra.mxu0 %v172_v4  ;;  %p175_p0 = scmp.ne.s32.totalorder %s147_s24, %s174_s0  ;;  %p180_p2 = scmp.lt.s32.totalorder %s174_s0, %s174_s0 }
   0x8   :  { %v125_v8 = vsub.s32 0, %v124_v7  ;;  %v129_v10 = vsub.s32 1, %v124_v7 }
   0x9   :  { %p181_p3 = por %p180_p2, %p179_p1 }
   0xa   :  { %162 = vmatmul.mubr.msk.bf16.vlgmr.msra.gmra.mrb[0].mxu0 %vm59_vm0, %v173_v5  ;;  %v126_v11 = vrot.slane %v121_v9, %v125_v8  ;;  %v130_v12 = vrot.slane %v121_v9, %v129_v10 }
   0xb   :  { %p182_p4 = pnand %p181_p3, %p175_p0 }
  0xdd   :  { %v97_v13 = vpop.f32.mrb[0].mxu0 }
  0xde   :  { %v133_v14 = vadd.f32 %v126_v11, %v97_v13  ;;  %v99_v15 = vpop.f32.mrb[1].mxu0 }
  0xdf   :  { %v134_v16 = vadd.f32 %v130_v12, %v99_v15  ;;  %v101_v17 = vpop.f32.mrb[2].mxu0 }
  0xe0   :  { %137 = vst [vmem:[#allocation3] sm:$0xff] %v133_v14  ;;  %v135_v18 = vadd.f32 %v126_v11, %v101_v17  ;;  %v103_v19 = vpop.f32.mrb[3].mxu0 }
  0xe1   :  { %138 = vst [vmem:[#allocation3 + $0x8] sm:$0xff] %v134_v16  ;;  %v136_v20 = vadd.f32 %v130_v12, %v103_v19 }
  0xe2   :  { %139 = vst [vmem:[#allocation3 + $0x10] sm:$0xff] %v135_v18 }
  0xe3   :  { %140 = vst [vmem:[#allocation3 + $0x18] sm:$0xff] %v136_v20 }
  0xe4   :  { %185 = shalt.err (!%p182_p4)
}
  0xe5   :  { %s186_s26 = scalar_lea.hbm %s255_s3, 512 }
  0xe6   :  { %p187_p5 = scmp.ne.s32.totalorder %s255_s3, %s186_s26  ;;  %p190_p6 = scmp.lt.u32.totalorder %s186_s26, %s255_s3 }
  0xe8   :  { %p192_p7 = pnand %p190_p6, %p187_p5 }
  0xea   :  { %195 = shalt.err (!%p192_p7)
}
  0xeb   :  { %s200_s4 = smov 256   ;;  %s201_s5 = smov 16  }
  0xec   :  { %152 = dma.vmem_to_hbm [thread:$0]  %s147_s24, 512, %s255_s3, [#allocation4], %s200_s4, %s200_s4, %s201_s5  }
  0xed   :  { %196 = dma.done.wait [#allocation4], 512  }
  0xee   :  { %197 = vsyncadd [#allocation4], 4294966784 }
  0xef   :  { %156 = vsyncpa [#allocation4], 1 }

</bundles_post_ra>
